<compile_context>
chip_gen: v7x
topology: tpu7x:2x2x1
jax: 0.10.0
libtpu: 0.0.40
codegen_flags: <defaults>
</compile_context>

<pallas_src>
import functools
import warnings

import jax
import jax.numpy as jnp
from jax.experimental import pallas as pl
from jax.experimental.pallas import tpu as pltpu


def _round_up(x, m):
    return ((x + m - 1) // m) * m


def _vmem_capacity_bytes(default=64 * 1024 * 1024):
    """Physical VMEM per TensorCore; conservative default if the query fails."""
    try:
        cap = getattr(pltpu.get_tpu_info(), "vmem_capacity_bytes", None)
        return int(cap) if cap else default
    except Exception:
        return default


def mha_kernel(qT_ref, kT_ref, vT_ref,
               wq_ref, bq_ref, wk_ref, bk_ref, wv_ref, bv_ref, woT_ref, bo_ref,
               o_ref, *, h, h_pad, d_k, attention_mult):
    """Token-on-lanes MHA tile: 4 MXU projections + VPU/EUP softmax attention."""
    f32 = jnp.float32

    # Projections computed directly in (feature, token) orientation so the token
    # axis (a multiple of 128) sits on lanes for the whole attention middle:
    #   X_T = W_raw(out, in) @ x_T(in, tile_n)  ->  (dpad, tile_n), f32 accum.
    QT = jnp.dot(wq_ref[...], qT_ref[...], preferred_element_type=f32) + bq_ref[...]
    KT = jnp.dot(wk_ref[...], kT_ref[...], preferred_element_type=f32) + bk_ref[...]
    VT = jnp.dot(wv_ref[...], vT_ref[...], preferred_element_type=f32) + bv_ref[...]
    tn = QT.shape[-1]

    def head(X, a):                         # (d_k, tile_n) slice of head `a`
        return X[a * d_k:(a + 1) * d_k, :]

    # torch: .view(-1, h, d_k).transpose(1, 2); attention contracts over heads.
    #   scores[j, i, n] = scale * sum_a Q[n, a, i] * K[n, a, j], token n on lanes.
    # scale = attention_mult * args.h / query.size(-1) = attention_mult (h cancels).
    # h / d_k are small compile-time ints -> unrolled full-lane-width VPU MACs
    # instead of tiny batched MXU matmuls; padded heads (a >= h) are exactly zero.
    scores = jnp.zeros((d_k, d_k, tn), f32)
    for a in range(h):
        scores = scores + head(KT, a)[:, None, :] * head(QT, a)[None, :, :]
    scores = scores * attention_mult

    # Softmax over j == axis 0 (leading, untiled axis -> pure VPU reductions;
    # exp runs on full 128-lane vregs; EUP approximate reciprocal for the denom).
    scores = scores - jnp.max(scores, axis=0, keepdims=True)
    e = jnp.exp(scores)
    p = e * pl.reciprocal(jnp.sum(e, axis=0, keepdims=True), approx=True)
    # TODO(synk): training-mode dropout on p_attn not implemented (inference path).

    # ctx[a*d_k + i, n] = sum_j p[j, i, n] * V[n, a, j]   -> (dpad, tile_n)
    ctx_rows = [jnp.sum(p * head(VT, a)[:, None, :], axis=0) for a in range(h)]
    if h_pad > h:                            # lane-padding heads contribute nothing
        ctx_rows.append(jnp.zeros(((h_pad - h) * d_k, tn), f32))
    ctxT = jnp.concatenate(ctx_rows, axis=0)

    # Single transpose back to token-major for a lane-dense (tile_n, dpad) output
    # tile, then the standard-orientation output projection on the MXU.
    ctx = ctxT.T.astype(woT_ref.dtype)
    out = jnp.dot(ctx, woT_ref[...], preferred_element_type=f32) + bo_ref[...]
    o_ref[...] = out.astype(o_ref.dtype)


def prepare_params(params, *, h, d_model, compute_dtype=jnp.bfloat16):
    """One-time weight prep (hoisted out of the per-call path).

    - Q/K/V weights stay in torch (out, in) layout (the kernel computes those
      projections in transposed, token-on-lanes orientation), zero-padded to a
      128-multiple feature size and cast to the MXU dtype (bf16 by default).
    - The output weight is pre-transposed to (in, out) for the final matmul.
    - Biases stay f32 (added to the f32 MXU accumulators).
    """
    assert d_model % h == 0
    d_k = d_model // h
    wq, bq, wk, bk, wv, bv, wo, bo = params

    dpad = _round_up(d_model, 128)
    if dpad % d_k != 0:
        # No lane padding possible without breaking the head split: output tiles
        # become lane-sparse (masked vst) and MXU operands misaligned.
        warnings.warn("feature padding skipped (128-rounded d_model not divisible "
                      "by d_k); expect reduced TPU lane utilisation.")
        dpad = d_model
    fpad = dpad - d_model

    pad_w = lambda w: jnp.pad(w, ((0, fpad), (0, fpad))).astype(compute_dtype)
    pad_b_col = lambda b: jnp.pad(b, (0, fpad)).reshape(dpad, 1).astype(jnp.float32)
    woT = jnp.pad(wo.T, ((0, fpad), (0, fpad))).astype(compute_dtype)
    bo_row = jnp.pad(bo, (0, fpad)).reshape(1, dpad).astype(jnp.float32)

    return (pad_w(wq), pad_b_col(bq), pad_w(wk), pad_b_col(bk),
            pad_w(wv), pad_b_col(bv), woT, bo_row)


def multi_head_attention(q, k, v, prepared_params, *, h, attention_mult=1.0,
                         tile_n=256):
    """Eval-mode forward of the PyTorch MultiHeadAttention module.

    tile_n: token tile (the lane axis of the attention middle).  256 is a safe
    default everywhere; use 512 on v6e (128 MiB VMEM) and 128 on v5e.
    """
    N, d_model = q.shape
    assert d_model % h == 0
    d_k = d_model // h
    wq, bq, wk, bk, wv, bv, woT, bo = prepared_params
    dpad = wq.shape[0]
    h_pad = dpad // d_k
    compute_dtype = wq.dtype

    # Token tiling: lane axis -> multiple of 128; keep >= 2 grid programs when
    # possible so v7x can shard the "parallel" axis across its 2 TensorCores.
    tile_n = max(128, (int(tile_n) // 128) * 128)
    tile_n = min(tile_n, _round_up(N, 128))
    n_pad = _round_up(N, tile_n)
    if n_pad // tile_n < 2 and tile_n > 128:
        tile_n = max(128, ((tile_n // 2) // 128) * 128)
        n_pad = _round_up(N, tile_n)
    tpad, fpad = n_pad - N, dpad - d_model

    # Per-call input prep: pad, transpose to (feature, token) so the kernel is
    # token-on-lanes, cast to the MXU dtype.  Padded token columns pass through
    # bias-only projections (finite values) and are sliced off at the end.
    prep = lambda x: jnp.pad(x, ((0, tpad), (0, fpad))).T.astype(compute_dtype)
    qT, kT, vT = prep(q), prep(k), prep(v)

    kernel = functools.partial(mha_kernel, h=h, h_pad=h_pad, d_k=d_k,
                               attention_mult=float(attention_mult))

    tok_spec = pl.BlockSpec((dpad, tile_n), lambda i: (0, i))
    out_spec = pl.BlockSpec((tile_n, dpad), lambda i: (i, 0))

    # VMEM budget: single-buffered weights, double-buffered token tiles, f32
    # intermediates; clamped to this chip's physical capacity (64 MiB/TC on v7x
    # vs 128 MiB on v5e/v6e -- never request more than exists).
    isz = jnp.dtype(compute_dtype).itemsize
    est = (4 * dpad * dpad * isz + 8 * dpad * 4
           + 3 * 2 * dpad * tile_n * isz            # double-buffered qT/kT/vT tiles
           + 2 * tile_n * dpad * q.dtype.itemsize   # double-buffered output tile
           + 3 * dpad * tile_n * 4                  # QT/KT/VT (f32)
           + 4 * d_k * d_k * tile_n * 4             # scores / exp / p
           + 2 * dpad * tile_n * 4)                 # ctxT + transpose
    vmem_cap = _vmem_capacity_bytes()
    vmem_limit = int(min(int(0.85 * vmem_cap), max(32 * 1024 * 1024, 2 * est)))
    # TODO(synk): for very large d_model on v7x (resident weights approaching the
    # 64 MiB budget) add a K-tiling grid axis ("arbitrary") with per-projection
    # accumulators instead of fully-resident weights.

    def build(weight_mode):
        wkw = {} if weight_mode is None else {"pipeline_mode": weight_mode}
        w_spec = pl.BlockSpec((dpad, dpad), lambda i: (0, 0), **wkw)
        bcol_spec = pl.BlockSpec((dpad, 1), lambda i: (0, 0), **wkw)
        brow_spec = pl.BlockSpec((1, dpad), lambda i: (0, 0), **wkw)
        return pl.pallas_call(
            kernel,
            out_shape=jax.ShapeDtypeStruct((n_pad, dpad), q.dtype),
            grid=(n_pad // tile_n,),
            in_specs=[tok_spec, tok_spec, tok_spec,
                      w_spec, bcol_spec, w_spec, bcol_spec,
                      w_spec, bcol_spec, w_spec, brow_spec],
            out_specs=out_spec,
            compiler_params=pltpu.CompilerParams(
                dimension_semantics=("parallel",),
                vmem_limit_bytes=vmem_limit),
        )

    args = (qT, kT, vT, wq, bq, wk, bk, wv, bv, woT, bo)
    try:
        # Weights/biases have a constant index_map -> nothing to double-buffer;
        # single-buffering halves their VMEM footprint (decisive on v7x, 64 MiB).
        out = build(pl.Buffered(1))(*args)
    except Exception:
        out = build(None)(*args)

    return out[:N, :d_model]


def mha_reference(q, k, v, params, *, h, attention_mult=1.0):
    """Pure-JAX reference mirroring the PyTorch forward exactly (f32)."""
    N, d_model = q.shape
    d_k = d_model // h
    wq, bq, wk, bk, wv, bv, wo, bo = params

    def proj(x, w, b):   # nn.Linear -> view(-1,h,d_k).transpose(1,2) -> (N, d_k, h)
        return jnp.transpose((x @ w.T + b).reshape(N, h, d_k), (0, 2, 1))

    Qt, Kt, Vt = proj(q, wq, bq), proj(k, wk, bk), proj(v, wv, bv)
    d_eff = Qt.shape[-1]                      # == h after the transpose
    scores = attention_mult * h * jnp.matmul(Qt, jnp.swapaxes(Kt, -2, -1)) / d_eff
    p = jax.nn.softmax(scores, axis=-1)
    x = jnp.matmul(p, Vt)                     # (N, d_k, h)
    x = jnp.transpose(x, (0, 2, 1)).reshape(N, h * d_k)
    return x @ wo.T + bo


def init_params(key, d_model):
    """Deterministic PyTorch-style nn.Linear init: U(-1/sqrt(in), 1/sqrt(in))."""
    bound = 1.0 / (d_model ** 0.5)
    keys = jax.random.split(key, 8)
    params = []
    for i in range(4):
        w = jax.random.uniform(keys[2 * i], (d_model, d_model),
                               minval=-bound, maxval=bound, dtype=jnp.float32)
        b = jax.random.uniform(keys[2 * i + 1], (d_model,),
                               minval=-bound, maxval=bound, dtype=jnp.float32)
        params += [w, b]
    return tuple(params)


if __name__ == "__main__":
    # Small shapes consistent with the module: batch=2, seq=8, d_model=32, h=4.
    batch, seq, d_model, h = 2, 8, 32, 4
    N = batch * seq

    key = jax.random.PRNGKey(0)
    kq, kk, kv, kp = jax.random.split(key, 4)
    q = jax.random.normal(kq, (N, d_model), dtype=jnp.float32)
    k = jax.random.normal(kk, (N, d_model), dtype=jnp.float32)
    v = jax.random.normal(kv, (N, d_model), dtype=jnp.float32)
    params = init_params(kp, d_model)

    # Weight prep happens once, outside the per-call path (review item).
    prepared = prepare_params(params, h=h, d_model=d_model)

    out = multi_head_attention(q, k, v, prepared, h=h, attention_mult=1.0)
    out = jax.block_until_ready(out)

    ref = mha_reference(q, k, v, params, h=h, attention_mult=1.0)
    assert out.shape == (N, d_model)
    # Tolerance accommodates bf16 MXU operands for the four projections plus the
    # EUP approximate reciprocal in the softmax denominator.
    assert jnp.allclose(out, ref, rtol=3e-2, atol=3e-2), "mismatch vs reference"

    print("KERNEL_OK")
</pallas_src>

<mosaic_0001>
module attributes {stable_mosaic.version = 11 : i64} {
  func.func @mha_kernel(%arg0: i32, %arg1: memref<128x128xbf16, #tpu.memory_space<vmem>>, %arg2: memref<128x128xbf16, #tpu.memory_space<vmem>>, %arg3: memref<128x128xbf16, #tpu.memory_space<vmem>>, %arg4: memref<128x128xbf16, #tpu.memory_space<vmem>>, %arg5: memref<128x1xf32, #tpu.memory_space<vmem>>, %arg6: memref<128x128xbf16, #tpu.memory_space<vmem>>, %arg7: memref<128x1xf32, #tpu.memory_space<vmem>>, %arg8: memref<128x128xbf16, #tpu.memory_space<vmem>>, %arg9: memref<128x1xf32, #tpu.memory_space<vmem>>, %arg10: memref<128x128xbf16, #tpu.memory_space<vmem>>, %arg11: memref<1x128xf32, #tpu.memory_space<vmem>>, %arg12: memref<128x128xf32, #tpu.memory_space<vmem>>) attributes {dimension_semantics = [#tpu.dimension_semantics<parallel>], iteration_bounds = array<i64: 1>, scalar_prefetch = 0 : i64, scratch_operands = 0 : i64, tpu.core_type = #tpu.core_type<tc>, window_params = [{transform_indices = @transform_0, window_bounds = array<i64: 128, 128>}, {transform_indices = @transform_1, window_bounds = array<i64: 128, 128>}, {transform_indices = @transform_2, window_bounds = array<i64: 128, 128>}, {pipeline_mode = #tpu.pipeline_mode<synchronous>, transform_indices = @transform_3, window_bounds = array<i64: 128, 128>}, {pipeline_mode = #tpu.pipeline_mode<synchronous>, transform_indices = @transform_4, window_bounds = array<i64: 128, 1>}, {pipeline_mode = #tpu.pipeline_mode<synchronous>, transform_indices = @transform_5, window_bounds = array<i64: 128, 128>}, {pipeline_mode = #tpu.pipeline_mode<synchronous>, transform_indices = @transform_6, window_bounds = array<i64: 128, 1>}, {pipeline_mode = #tpu.pipeline_mode<synchronous>, transform_indices = @transform_7, window_bounds = array<i64: 128, 128>}, {pipeline_mode = #tpu.pipeline_mode<synchronous>, transform_indices = @transform_8, window_bounds = array<i64: 128, 1>}, {pipeline_mode = #tpu.pipeline_mode<synchronous>, transform_indices = @transform_9, window_bounds = array<i64: 128, 128>}, {pipeline_mode = #tpu.pipeline_mode<synchronous>, transform_indices = @transform_10, window_bounds = array<i64: 1, 128>}, {transform_indices = @transform_11, window_bounds = array<i64: 128, 128>}]} {
    %c0 = arith.constant 0 : index
    %c0_0 = arith.constant 0 : index
    %0 = vector.load %arg4[%c0, %c0_0] : memref<128x128xbf16, #tpu.memory_space<vmem>>, vector<128x128xbf16>
    %c0_1 = arith.constant 0 : index
    %c0_2 = arith.constant 0 : index
    %1 = vector.load %arg1[%c0_1, %c0_2] : memref<128x128xbf16, #tpu.memory_space<vmem>>, vector<128x128xbf16>
    %cst = arith.constant dense<0.000000e+00> : vector<128x128xf32>
    %2 = tpu.matmul %0, %1, %cst {dimension_numbers = #tpu.dot_dimension_numbers<[1], [0], [0], [1], [0, 0, 1, 1], [], []>} : vector<128x128xbf16>, vector<128x128xbf16>, vector<128x128xf32> -> vector<128x128xf32>
    %c0_3 = arith.constant 0 : index
    %c0_4 = arith.constant 0 : index
    %3 = vector.load %arg5[%c0_3, %c0_4] : memref<128x1xf32, #tpu.memory_space<vmem>>, vector<128x1xf32>
    %4 = vector.broadcast %3 : vector<128x1xf32> to vector<128x128xf32>
    %5 = arith.addf %2, %4 : vector<128x128xf32>
    %c0_5 = arith.constant 0 : index
    %c0_6 = arith.constant 0 : index
    %6 = vector.load %arg6[%c0_5, %c0_6] : memref<128x128xbf16, #tpu.memory_space<vmem>>, vector<128x128xbf16>
    %c0_7 = arith.constant 0 : index
    %c0_8 = arith.constant 0 : index
    %7 = vector.load %arg2[%c0_7, %c0_8] : memref<128x128xbf16, #tpu.memory_space<vmem>>, vector<128x128xbf16>
    %cst_9 = arith.constant dense<0.000000e+00> : vector<128x128xf32>
    %8 = tpu.matmul %6, %7, %cst_9 {dimension_numbers = #tpu.dot_dimension_numbers<[1], [0], [0], [1], [0, 0, 1, 1], [], []>} : vector<128x128xbf16>, vector<128x128xbf16>, vector<128x128xf32> -> vector<128x128xf32>
    %c0_10 = arith.constant 0 : index
    %c0_11 = arith.constant 0 : index
    %9 = vector.load %arg7[%c0_10, %c0_11] : memref<128x1xf32, #tpu.memory_space<vmem>>, vector<128x1xf32>
    %10 = vector.broadcast %9 : vector<128x1xf32> to vector<128x128xf32>
    %11 = arith.addf %8, %10 : vector<128x128xf32>
    %c0_12 = arith.constant 0 : index
    %c0_13 = arith.constant 0 : index
    %12 = vector.load %arg8[%c0_12, %c0_13] : memref<128x128xbf16, #tpu.memory_space<vmem>>, vector<128x128xbf16>
    %c0_14 = arith.constant 0 : index
    %c0_15 = arith.constant 0 : index
    %13 = vector.load %arg3[%c0_14, %c0_15] : memref<128x128xbf16, #tpu.memory_space<vmem>>, vector<128x128xbf16>
    %cst_16 = arith.constant dense<0.000000e+00> : vector<128x128xf32>
    %14 = tpu.matmul %12, %13, %cst_16 {dimension_numbers = #tpu.dot_dimension_numbers<[1], [0], [0], [1], [0, 0, 1, 1], [], []>} : vector<128x128xbf16>, vector<128x128xbf16>, vector<128x128xf32> -> vector<128x128xf32>
    %c0_17 = arith.constant 0 : index
    %c0_18 = arith.constant 0 : index
    %15 = vector.load %arg9[%c0_17, %c0_18] : memref<128x1xf32, #tpu.memory_space<vmem>>, vector<128x1xf32>
    %16 = vector.broadcast %15 : vector<128x1xf32> to vector<128x128xf32>
    %17 = arith.addf %14, %16 : vector<128x128xf32>
    %cst_19 = arith.constant 0.000000e+00 : f32
    %18 = vector.broadcast %cst_19 : f32 to vector<8x8x128xf32>
    %19 = vector.extract_strided_slice %11 {offsets = [0, 0], sizes = [8, 128], strides = [1, 1]} : vector<128x128xf32> to vector<8x128xf32>
    %20 = vector.shape_cast %19 : vector<8x128xf32> to vector<8x1x128xf32>
    %21 = vector.extract_strided_slice %5 {offsets = [0, 0], sizes = [8, 128], strides = [1, 1]} : vector<128x128xf32> to vector<8x128xf32>
    %22 = vector.shape_cast %21 : vector<8x128xf32> to vector<1x8x128xf32>
    %23 = vector.broadcast %20 : vector<8x1x128xf32> to vector<8x8x128xf32>
    %24 = vector.broadcast %22 : vector<1x8x128xf32> to vector<8x8x128xf32>
    %25 = arith.mulf %23, %24 : vector<8x8x128xf32>
    %26 = arith.addf %18, %25 : vector<8x8x128xf32>
    %27 = vector.extract_strided_slice %11 {offsets = [8, 0], sizes = [8, 128], strides = [1, 1]} : vector<128x128xf32> to vector<8x128xf32>
    %28 = vector.shape_cast %27 : vector<8x128xf32> to vector<8x1x128xf32>
    %29 = vector.extract_strided_slice %5 {offsets = [8, 0], sizes = [8, 128], strides = [1, 1]} : vector<128x128xf32> to vector<8x128xf32>
    %30 = vector.shape_cast %29 : vector<8x128xf32> to vector<1x8x128xf32>
    %31 = vector.broadcast %28 : vector<8x1x128xf32> to vector<8x8x128xf32>
    %32 = vector.broadcast %30 : vector<1x8x128xf32> to vector<8x8x128xf32>
    %33 = arith.mulf %31, %32 : vector<8x8x128xf32>
    %34 = arith.addf %26, %33 : vector<8x8x128xf32>
    %35 = vector.extract_strided_slice %11 {offsets = [16, 0], sizes = [8, 128], strides = [1, 1]} : vector<128x128xf32> to vector<8x128xf32>
    %36 = vector.shape_cast %35 : vector<8x128xf32> to vector<8x1x128xf32>
    %37 = vector.extract_strided_slice %5 {offsets = [16, 0], sizes = [8, 128], strides = [1, 1]} : vector<128x128xf32> to vector<8x128xf32>
    %38 = vector.shape_cast %37 : vector<8x128xf32> to vector<1x8x128xf32>
    %39 = vector.broadcast %36 : vector<8x1x128xf32> to vector<8x8x128xf32>
    %40 = vector.broadcast %38 : vector<1x8x128xf32> to vector<8x8x128xf32>
    %41 = arith.mulf %39, %40 : vector<8x8x128xf32>
    %42 = arith.addf %34, %41 : vector<8x8x128xf32>
    %43 = vector.extract_strided_slice %11 {offsets = [24, 0], sizes = [8, 128], strides = [1, 1]} : vector<128x128xf32> to vector<8x128xf32>
    %44 = vector.shape_cast %43 : vector<8x128xf32> to vector<8x1x128xf32>
    %45 = vector.extract_strided_slice %5 {offsets = [24, 0], sizes = [8, 128], strides = [1, 1]} : vector<128x128xf32> to vector<8x128xf32>
    %46 = vector.shape_cast %45 : vector<8x128xf32> to vector<1x8x128xf32>
    %47 = vector.broadcast %44 : vector<8x1x128xf32> to vector<8x8x128xf32>
    %48 = vector.broadcast %46 : vector<1x8x128xf32> to vector<8x8x128xf32>
    %49 = arith.mulf %47, %48 : vector<8x8x128xf32>
    %50 = arith.addf %42, %49 : vector<8x8x128xf32>
    %cst_20 = arith.constant 1.000000e+00 : f32
    %51 = vector.broadcast %cst_20 : f32 to vector<8x8x128xf32>
    %52 = arith.mulf %50, %51 : vector<8x8x128xf32>
    %cst_21 = arith.constant dense<0xFF800000> : vector<8x128xf32>
    %53 = vector.multi_reduction <maximumf>, %52, %cst_21 [0] : vector<8x8x128xf32> to vector<8x128xf32>
    %54 = vector.shape_cast %53 : vector<8x128xf32> to vector<1x8x128xf32>
    %55 = vector.broadcast %54 : vector<1x8x128xf32> to vector<8x8x128xf32>
    %56 = arith.subf %52, %55 : vector<8x8x128xf32>
    %57 = math.exp %56 : vector<8x8x128xf32>
    %cst_22 = arith.constant dense<0.000000e+00> : vector<8x128xf32>
    %58 = vector.multi_reduction <add>, %57, %cst_22 [0] : vector<8x8x128xf32> to vector<8x128xf32>
    %59 = vector.shape_cast %58 : vector<8x128xf32> to vector<1x8x128xf32>
    %60 = tpu.reciprocal %59 {approx = true} : vector<1x8x128xf32> -> vector<1x8x128xf32>
    %61 = vector.broadcast %60 : vector<1x8x128xf32> to vector<8x8x128xf32>
    %62 = arith.mulf %57, %61 : vector<8x8x128xf32>
    %63 = vector.extract_strided_slice %17 {offsets = [0, 0], sizes = [8, 128], strides = [1, 1]} : vector<128x128xf32> to vector<8x128xf32>
    %64 = vector.shape_cast %63 : vector<8x128xf32> to vector<8x1x128xf32>
    %65 = vector.broadcast %64 : vector<8x1x128xf32> to vector<8x8x128xf32>
    %66 = arith.mulf %62, %65 : vector<8x8x128xf32>
    %cst_23 = arith.constant dense<0.000000e+00> : vector<8x128xf32>
    %67 = vector.multi_reduction <add>, %66, %cst_23 [0] : vector<8x8x128xf32> to vector<8x128xf32>
    %68 = vector.extract_strided_slice %17 {offsets = [8, 0], sizes = [8, 128], strides = [1, 1]} : vector<128x128xf32> to vector<8x128xf32>
    %69 = vector.shape_cast %68 : vector<8x128xf32> to vector<8x1x128xf32>
    %70 = vector.broadcast %69 : vector<8x1x128xf32> to vector<8x8x128xf32>
    %71 = arith.mulf %62, %70 : vector<8x8x128xf32>
    %cst_24 = arith.constant dense<0.000000e+00> : vector<8x128xf32>
    %72 = vector.multi_reduction <add>, %71, %cst_24 [0] : vector<8x8x128xf32> to vector<8x128xf32>
    %73 = vector.extract_strided_slice %17 {offsets = [16, 0], sizes = [8, 128], strides = [1, 1]} : vector<128x128xf32> to vector<8x128xf32>
    %74 = vector.shape_cast %73 : vector<8x128xf32> to vector<8x1x128xf32>
    %75 = vector.broadcast %74 : vector<8x1x128xf32> to vector<8x8x128xf32>
    %76 = arith.mulf %62, %75 : vector<8x8x128xf32>
    %cst_25 = arith.constant dense<0.000000e+00> : vector<8x128xf32>
    %77 = vector.multi_reduction <add>, %76, %cst_25 [0] : vector<8x8x128xf32> to vector<8x128xf32>
    %78 = vector.extract_strided_slice %17 {offsets = [24, 0], sizes = [8, 128], strides = [1, 1]} : vector<128x128xf32> to vector<8x128xf32>
    %79 = vector.shape_cast %78 : vector<8x128xf32> to vector<8x1x128xf32>
    %80 = vector.broadcast %79 : vector<8x1x128xf32> to vector<8x8x128xf32>
    %81 = arith.mulf %62, %80 : vector<8x8x128xf32>
    %cst_26 = arith.constant dense<0.000000e+00> : vector<8x128xf32>
    %82 = vector.multi_reduction <add>, %81, %cst_26 [0] : vector<8x8x128xf32> to vector<8x128xf32>
    %cst_27 = arith.constant 0.000000e+00 : f32
    %83 = vector.broadcast %cst_27 : f32 to vector<96x128xf32>
    %84 = tpu.concatenate %67, %72, %77, %82, %83 in 0 : vector<8x128xf32>, vector<8x128xf32>, vector<8x128xf32>, vector<8x128xf32>, vector<96x128xf32> -> vector<128x128xf32>
    %85 = tpu.transpose %84, [1, 0] : vector<128x128xf32> -> vector<128x128xf32>
    %86 = arith.truncf %85 : vector<128x128xf32> to vector<128x128xbf16>
    %c0_28 = arith.constant 0 : index
    %c0_29 = arith.constant 0 : index
    %87 = vector.load %arg10[%c0_28, %c0_29] : memref<128x128xbf16, #tpu.memory_space<vmem>>, vector<128x128xbf16>
    %cst_30 = arith.constant dense<0.000000e+00> : vector<128x128xf32>
    %88 = tpu.matmul %86, %87, %cst_30 {dimension_numbers = #tpu.dot_dimension_numbers<[1], [0], [0], [1], [0, 0, 1, 1], [], []>} : vector<128x128xbf16>, vector<128x128xbf16>, vector<128x128xf32> -> vector<128x128xf32>
    %c0_31 = arith.constant 0 : index
    %c0_32 = arith.constant 0 : index
    %89 = vector.load %arg11[%c0_31, %c0_32] : memref<1x128xf32, #tpu.memory_space<vmem>>, vector<1x128xf32>
    %90 = vector.broadcast %89 : vector<1x128xf32> to vector<128x128xf32>
    %91 = arith.addf %88, %90 : vector<128x128xf32>
    %c0_33 = arith.constant 0 : index
    %c0_34 = arith.constant 0 : index
    %92 = vector.load %arg12[%c0_33, %c0_34] : memref<128x128xf32, #tpu.memory_space<vmem>>, vector<128x128xf32>
    tpu.vector_store %arg12[%c0_33, %c0_34], %91 {strides = array<i32>} : memref<128x128xf32, #tpu.memory_space<vmem>>, vector<128x128xf32>,
    return
  }
  func.func @transform_0(%arg0: i32) -> (i32, i32) {
    %c0_i32 = arith.constant 0 : i32
    %c0_i32_0 = arith.constant 0 : i32
    return %c0_i32, %arg0 : i32, i32
  }
  func.func @transform_1(%arg0: i32) -> (i32, i32) {
    %c0_i32 = arith.constant 0 : i32
    %c0_i32_0 = arith.constant 0 : i32
    return %c0_i32, %arg0 : i32, i32
  }
  func.func @transform_2(%arg0: i32) -> (i32, i32) {
    %c0_i32 = arith.constant 0 : i32
    %c0_i32_0 = arith.constant 0 : i32
    return %c0_i32, %arg0 : i32, i32
  }
  func.func @transform_3(%arg0: i32) -> (i32, i32) {
    %c0_i32 = arith.constant 0 : i32
    %c0_i32_0 = arith.constant 0 : i32
    %c0_i32_1 = arith.constant 0 : i32
    return %c0_i32, %c0_i32_0 : i32, i32
  }
  func.func @transform_4(%arg0: i32) -> (i32, i32) {
    %c0_i32 = arith.constant 0 : i32
    %c0_i32_0 = arith.constant 0 : i32
    %c0_i32_1 = arith.constant 0 : i32
    return %c0_i32, %c0_i32_0 : i32, i32
  }
  func.func @transform_5(%arg0: i32) -> (i32, i32) {
    %c0_i32 = arith.constant 0 : i32
    %c0_i32_0 = arith.constant 0 : i32
    %c0_i32_1 = arith.constant 0 : i32
    return %c0_i32, %c0_i32_0 : i32, i32
  }
  func.func @transform_6(%arg0: i32) -> (i32, i32) {
    %c0_i32 = arith.constant 0 : i32
    %c0_i32_0 = arith.constant 0 : i32
    %c0_i32_1 = arith.constant 0 : i32
    return %c0_i32, %c0_i32_0 : i32, i32
  }
  func.func @transform_7(%arg0: i32) -> (i32, i32) {
    %c0_i32 = arith.constant 0 : i32
    %c0_i32_0 = arith.constant 0 : i32
    %c0_i32_1 = arith.constant 0 : i32
    return %c0_i32, %c0_i32_0 : i32, i32
  }
  func.func @transform_8(%arg0: i32) -> (i32, i32) {
    %c0_i32 = arith.constant 0 : i32
    %c0_i32_0 = arith.constant 0 : i32
    %c0_i32_1 = arith.constant 0 : i32
    return %c0_i32, %c0_i32_0 : i32, i32
  }
  func.func @transform_9(%arg0: i32) -> (i32, i32) {
    %c0_i32 = arith.constant 0 : i32
    %c0_i32_0 = arith.constant 0 : i32
    %c0_i32_1 = arith.constant 0 : i32
    return %c0_i32, %c0_i32_0 : i32, i32
  }
  func.func @transform_10(%arg0: i32) -> (i32, i32) {
    %c0_i32 = arith.constant 0 : i32
    %c0_i32_0 = arith.constant 0 : i32
    %c0_i32_1 = arith.constant 0 : i32
    return %c0_i32, %c0_i32_0 : i32, i32
  }
  func.func @transform_11(%arg0: i32) -> (i32, i32) {
    %c0_i32 = arith.constant 0 : i32
    %c0_i32_0 = arith.constant 0 : i32
    return %arg0, %c0_i32 : i32, i32
  }
}

module attributes {stable_mosaic.version = 11 : i64} {
  func.func @mha_kernel(%arg0: i32, %arg1: memref<128x128xbf16, #tpu.memory_space<vmem>>, %arg2: memref<128x128xbf16, #tpu.memory_space<vmem>>, %arg3: memref<128x128xbf16, #tpu.memory_space<vmem>>, %arg4: memref<128x128xbf16, #tpu.memory_space<vmem>>, %arg5: memref<128x1xf32, #tpu.memory_space<vmem>>, %arg6: memref<128x128xbf16, #tpu.memory_space<vmem>>, %arg7: memref<128x1xf32, #tpu.memory_space<vmem>>, %arg8: memref<128x128xbf16, #tpu.memory_space<vmem>>, %arg9: memref<128x1xf32, #tpu.memory_space<vmem>>, %arg10: memref<128x128xbf16, #tpu.memory_space<vmem>>, %arg11: memref<1x128xf32, #tpu.memory_space<vmem>>, %arg12: memref<128x128xf32, #tpu.memory_space<vmem>>) attributes {dimension_semantics = [#tpu.dimension_semantics<parallel>], iteration_bounds = array<i64: 1>, scalar_prefetch = 0 : i64, scratch_operands = 0 : i64, tpu.core_type = #tpu.core_type<tc>, window_params = [{transform_indices = @transform_0, window_bounds = array<i64: 128, 128>}, {transform_indices = @transform_1, window_bounds = array<i64: 128, 128>}, {transform_indices = @transform_2, window_bounds = array<i64: 128, 128>}, {pipeline_mode = #tpu.pipeline_mode<synchronous>, transform_indices = @transform_3, window_bounds = array<i64: 128, 128>}, {pipeline_mode = #tpu.pipeline_mode<synchronous>, transform_indices = @transform_4, window_bounds = array<i64: 128, 1>}, {pipeline_mode = #tpu.pipeline_mode<synchronous>, transform_indices = @transform_5, window_bounds = array<i64: 128, 128>}, {pipeline_mode = #tpu.pipeline_mode<synchronous>, transform_indices = @transform_6, window_bounds = array<i64: 128, 1>}, {pipeline_mode = #tpu.pipeline_mode<synchronous>, transform_indices = @transform_7, window_bounds = array<i64: 128, 128>}, {pipeline_mode = #tpu.pipeline_mode<synchronous>, transform_indices = @transform_8, window_bounds = array<i64: 128, 1>}, {pipeline_mode = #tpu.pipeline_mode<synchronous>, transform_indices = @transform_9, window_bounds = array<i64: 128, 128>}, {pipeline_mode = #tpu.pipeline_mode<synchronous>, transform_indices = @transform_10, window_bounds = array<i64: 1, 128>}, {transform_indices = @transform_11, window_bounds = array<i64: 128, 128>}]} {
    %c0 = arith.constant 0 : index
    %c0_0 = arith.constant 0 : index
    %0 = vector.load %arg4[%c0, %c0_0] : memref<128x128xbf16, #tpu.memory_space<vmem>>, vector<128x128xbf16>
    %c0_1 = arith.constant 0 : index
    %c0_2 = arith.constant 0 : index
    %1 = vector.load %arg1[%c0_1, %c0_2] : memref<128x128xbf16, #tpu.memory_space<vmem>>, vector<128x128xbf16>
    %cst = arith.constant dense<0.000000e+00> : vector<128x128xf32>
    %2 = tpu.matmul %0, %1, %cst {dimension_numbers = #tpu.dot_dimension_numbers<[1], [0], [0], [1], [0, 0, 1, 1], [], []>} : vector<128x128xbf16>, vector<128x128xbf16>, vector<128x128xf32> -> vector<128x128xf32>
    %c0_3 = arith.constant 0 : index
    %c0_4 = arith.constant 0 : index
    %3 = vector.load %arg5[%c0_3, %c0_4] : memref<128x1xf32, #tpu.memory_space<vmem>>, vector<128x1xf32>
    %4 = vector.broadcast %3 : vector<128x1xf32> to vector<128x128xf32>
    %5 = arith.addf %2, %4 : vector<128x128xf32>
    %c0_5 = arith.constant 0 : index
    %c0_6 = arith.constant 0 : index
    %6 = vector.load %arg6[%c0_5, %c0_6] : memref<128x128xbf16, #tpu.memory_space<vmem>>, vector<128x128xbf16>
    %c0_7 = arith.constant 0 : index
    %c0_8 = arith.constant 0 : index
    %7 = vector.load %arg2[%c0_7, %c0_8] : memref<128x128xbf16, #tpu.memory_space<vmem>>, vector<128x128xbf16>
    %cst_9 = arith.constant dense<0.000000e+00> : vector<128x128xf32>
    %8 = tpu.matmul %6, %7, %cst_9 {dimension_numbers = #tpu.dot_dimension_numbers<[1], [0], [0], [1], [0, 0, 1, 1], [], []>} : vector<128x128xbf16>, vector<128x128xbf16>, vector<128x128xf32> -> vector<128x128xf32>
    %c0_10 = arith.constant 0 : index
    %c0_11 = arith.constant 0 : index
    %9 = vector.load %arg7[%c0_10, %c0_11] : memref<128x1xf32, #tpu.memory_space<vmem>>, vector<128x1xf32>
    %10 = vector.broadcast %9 : vector<128x1xf32> to vector<128x128xf32>
    %11 = arith.addf %8, %10 : vector<128x128xf32>
    %c0_12 = arith.constant 0 : index
    %c0_13 = arith.constant 0 : index
    %12 = vector.load %arg8[%c0_12, %c0_13] : memref<128x128xbf16, #tpu.memory_space<vmem>>, vector<128x128xbf16>
    %c0_14 = arith.constant 0 : index
    %c0_15 = arith.constant 0 : index
    %13 = vector.load %arg3[%c0_14, %c0_15] : memref<128x128xbf16, #tpu.memory_space<vmem>>, vector<128x128xbf16>
    %cst_16 = arith.constant dense<0.000000e+00> : vector<128x128xf32>
    %14 = tpu.matmul %12, %13, %cst_16 {dimension_numbers = #tpu.dot_dimension_numbers<[1], [0], [0], [1], [0, 0, 1, 1], [], []>} : vector<128x128xbf16>, vector<128x128xbf16>, vector<128x128xf32> -> vector<128x128xf32>
    %c0_17 = arith.constant 0 : index
    %c0_18 = arith.constant 0 : index
    %15 = vector.load %arg9[%c0_17, %c0_18] : memref<128x1xf32, #tpu.memory_space<vmem>>, vector<128x1xf32>
    %16 = vector.broadcast %15 : vector<128x1xf32> to vector<128x128xf32>
    %17 = arith.addf %14, %16 : vector<128x128xf32>
    %cst_19 = arith.constant 0.000000e+00 : f32
    %18 = vector.broadcast %cst_19 : f32 to vector<8x8x128xf32>
    %19 = vector.extract_strided_slice %11 {offsets = [0, 0], sizes = [8, 128], strides = [1, 1]} : vector<128x128xf32> to vector<8x128xf32>
    %20 = vector.shape_cast %19 : vector<8x128xf32> to vector<8x1x128xf32>
    %21 = vector.extract_strided_slice %5 {offsets = [0, 0], sizes = [8, 128], strides = [1, 1]} : vector<128x128xf32> to vector<8x128xf32>
    %22 = vector.shape_cast %21 : vector<8x128xf32> to vector<1x8x128xf32>
    %23 = vector.broadcast %20 : vector<8x1x128xf32> to vector<8x8x128xf32>
    %24 = vector.broadcast %22 : vector<1x8x128xf32> to vector<8x8x128xf32>
    %25 = arith.mulf %23, %24 : vector<8x8x128xf32>
    %26 = arith.addf %18, %25 : vector<8x8x128xf32>
    %27 = vector.extract_strided_slice %11 {offsets = [8, 0], sizes = [8, 128], strides = [1, 1]} : vector<128x128xf32> to vector<8x128xf32>
    %28 = vector.shape_cast %27 : vector<8x128xf32> to vector<8x1x128xf32>
    %29 = vector.extract_strided_slice %5 {offsets = [8, 0], sizes = [8, 128], strides = [1, 1]} : vector<128x128xf32> to vector<8x128xf32>
    %30 = vector.shape_cast %29 : vector<8x128xf32> to vector<1x8x128xf32>
    %31 = vector.broadcast %28 : vector<8x1x128xf32> to vector<8x8x128xf32>
    %32 = vector.broadcast %30 : vector<1x8x128xf32> to vector<8x8x128xf32>
    %33 = arith.mulf %31, %32 : vector<8x8x128xf32>
    %34 = arith.addf %26, %33 : vector<8x8x128xf32>
    %35 = vector.extract_strided_slice %11 {offsets = [16, 0], sizes = [8, 128], strides = [1, 1]} : vector<128x128xf32> to vector<8x128xf32>
    %36 = vector.shape_cast %35 : vector<8x128xf32> to vector<8x1x128xf32>
    %37 = vector.extract_strided_slice %5 {offsets = [16, 0], sizes = [8, 128], strides = [1, 1]} : vector<128x128xf32> to vector<8x128xf32>
    %38 = vector.shape_cast %37 : vector<8x128xf32> to vector<1x8x128xf32>
    %39 = vector.broadcast %36 : vector<8x1x128xf32> to vector<8x8x128xf32>
    %40 = vector.broadcast %38 : vector<1x8x128xf32> to vector<8x8x128xf32>
    %41 = arith.mulf %39, %40 : vector<8x8x128xf32>
    %42 = arith.addf %34, %41 : vector<8x8x128xf32>
    %43 = vector.extract_strided_slice %11 {offsets = [24, 0], sizes = [8, 128], strides = [1, 1]} : vector<128x128xf32> to vector<8x128xf32>
    %44 = vector.shape_cast %43 : vector<8x128xf32> to vector<8x1x128xf32>
    %45 = vector.extract_strided_slice %5 {offsets = [24, 0], sizes = [8, 128], strides = [1, 1]} : vector<128x128xf32> to vector<8x128xf32>
    %46 = vector.shape_cast %45 : vector<8x128xf32> to vector<1x8x128xf32>
    %47 = vector.broadcast %44 : vector<8x1x128xf32> to vector<8x8x128xf32>
    %48 = vector.broadcast %46 : vector<1x8x128xf32> to vector<8x8x128xf32>
    %49 = arith.mulf %47, %48 : vector<8x8x128xf32>
    %50 = arith.addf %42, %49 : vector<8x8x128xf32>
    %cst_20 = arith.constant 1.000000e+00 : f32
    %51 = vector.broadcast %cst_20 : f32 to vector<8x8x128xf32>
    %52 = arith.mulf %50, %51 : vector<8x8x128xf32>
    %cst_21 = arith.constant dense<0xFF800000> : vector<8x128xf32>
    %53 = vector.multi_reduction <maximumf>, %52, %cst_21 [0] : vector<8x8x128xf32> to vector<8x128xf32>
    %54 = vector.shape_cast %53 : vector<8x128xf32> to vector<1x8x128xf32>
    %55 = vector.broadcast %54 : vector<1x8x128xf32> to vector<8x8x128xf32>
    %56 = arith.subf %52, %55 : vector<8x8x128xf32>
    %57 = math.exp %56 : vector<8x8x128xf32>
    %cst_22 = arith.constant dense<0.000000e+00> : vector<8x128xf32>
    %58 = vector.multi_reduction <add>, %57, %cst_22 [0] : vector<8x8x128xf32> to vector<8x128xf32>
    %59 = vector.shape_cast %58 : vector<8x128xf32> to vector<1x8x128xf32>
    %60 = tpu.reciprocal %59 {approx = true} : vector<1x8x128xf32> -> vector<1x8x128xf32>
    %61 = vector.broadcast %60 : vector<1x8x128xf32> to vector<8x8x128xf32>
    %62 = arith.mulf %57, %61 : vector<8x8x128xf32>
    %63 = vector.extract_strided_slice %17 {offsets = [0, 0], sizes = [8, 128], strides = [1, 1]} : vector<128x128xf32> to vector<8x128xf32>
    %64 = vector.shape_cast %63 : vector<8x128xf32> to vector<8x1x128xf32>
    %65 = vector.broadcast %64 : vector<8x1x128xf32> to vector<8x8x128xf32>
    %66 = arith.mulf %62, %65 : vector<8x8x128xf32>
    %cst_23 = arith.constant dense<0.000000e+00> : vector<8x128xf32>
    %67 = vector.multi_reduction <add>, %66, %cst_23 [0] : vector<8x8x128xf32> to vector<8x128xf32>
    %68 = vector.extract_strided_slice %17 {offsets = [8, 0], sizes = [8, 128], strides = [1, 1]} : vector<128x128xf32> to vector<8x128xf32>
    %69 = vector.shape_cast %68 : vector<8x128xf32> to vector<8x1x128xf32>
    %70 = vector.broadcast %69 : vector<8x1x128xf32> to vector<8x8x128xf32>
    %71 = arith.mulf %62, %70 : vector<8x8x128xf32>
    %cst_24 = arith.constant dense<0.000000e+00> : vector<8x128xf32>
    %72 = vector.multi_reduction <add>, %71, %cst_24 [0] : vector<8x8x128xf32> to vector<8x128xf32>
    %73 = vector.extract_strided_slice %17 {offsets = [16, 0], sizes = [8, 128], strides = [1, 1]} : vector<128x128xf32> to vector<8x128xf32>
    %74 = vector.shape_cast %73 : vector<8x128xf32> to vector<8x1x128xf32>
    %75 = vector.broadcast %74 : vector<8x1x128xf32> to vector<8x8x128xf32>
    %76 = arith.mulf %62, %75 : vector<8x8x128xf32>
    %cst_25 = arith.constant dense<0.000000e+00> : vector<8x128xf32>
    %77 = vector.multi_reduction <add>, %76, %cst_25 [0] : vector<8x8x128xf32> to vector<8x128xf32>
    %78 = vector.extract_strided_slice %17 {offsets = [24, 0], sizes = [8, 128], strides = [1, 1]} : vector<128x128xf32> to vector<8x128xf32>
    %79 = vector.shape_cast %78 : vector<8x128xf32> to vector<8x1x128xf32>
    %80 = vector.broadcast %79 : vector<8x1x128xf32> to vector<8x8x128xf32>
    %81 = arith.mulf %62, %80 : vector<8x8x128xf32>
    %cst_26 = arith.constant dense<0.000000e+00> : vector<8x128xf32>
    %82 = vector.multi_reduction <add>, %81, %cst_26 [0] : vector<8x8x128xf32> to vector<8x128xf32>
    %cst_27 = arith.constant 0.000000e+00 : f32
    %83 = vector.broadcast %cst_27 : f32 to vector<96x128xf32>
    %84 = tpu.concatenate %67, %72, %77, %82, %83 in 0 : vector<8x128xf32>, vector<8x128xf32>, vector<8x128xf32>, vector<8x128xf32>, vector<96x128xf32> -> vector<128x128xf32>
    %85 = tpu.transpose %84, [1, 0] : vector<128x128xf32> -> vector<128x128xf32>
    %86 = arith.truncf %85 : vector<128x128xf32> to vector<128x128xbf16>
    %c0_28 = arith.constant 0 : index
    %c0_29 = arith.constant 0 : index
    %87 = vector.load %arg10[%c0_28, %c0_29] : memref<128x128xbf16, #tpu.memory_space<vmem>>, vector<128x128xbf16>
    %cst_30 = arith.constant dense<0.000000e+00> : vector<128x128xf32>
    %88 = tpu.matmul %86, %87, %cst_30 {dimension_numbers = #tpu.dot_dimension_numbers<[1], [0], [0], [1], [0, 0, 1, 1], [], []>} : vector<128x128xbf16>, vector<128x128xbf16>, vector<128x128xf32> -> vector<128x128xf32>
    %c0_31 = arith.constant 0 : index
    %c0_32 = arith.constant 0 : index
    %89 = vector.load %arg11[%c0_31, %c0_32] : memref<1x128xf32, #tpu.memory_space<vmem>>, vector<1x128xf32>
    %90 = vector.broadcast %89 : vector<1x128xf32> to vector<128x128xf32>
    %91 = arith.addf %88, %90 : vector<128x128xf32>
    %c0_33 = arith.constant 0 : index
    %c0_34 = arith.constant 0 : index
    %92 = vector.load %arg12[%c0_33, %c0_34] : memref<128x128xf32, #tpu.memory_space<vmem>>, vector<128x128xf32>
    tpu.vector_store %arg12[%c0_33, %c0_34], %91 {strides = array<i32>} : memref<128x128xf32, #tpu.memory_space<vmem>>, vector<128x128xf32>,
    return
  }
  func.func @transform_0(%arg0: i32) -> (i32, i32) {
    %c0_i32 = arith.constant 0 : i32
    %c0_i32_0 = arith.constant 0 : i32
    return %c0_i32, %arg0 : i32, i32
  }
  func.func @transform_1(%arg0: i32) -> (i32, i32) {
    %c0_i32 = arith.constant 0 : i32
    %c0_i32_0 = arith.constant 0 : i32
    return %c0_i32, %arg0 : i32, i32
  }
  func.func @transform_2(%arg0: i32) -> (i32, i32) {
    %c0_i32 = arith.constant 0 : i32
    %c0_i32_0 = arith.constant 0 : i32
    return %c0_i32, %arg0 : i32, i32
  }
  func.func @transform_3(%arg0: i32) -> (i32, i32) {
    %c0_i32 = arith.constant 0 : i32
    %c0_i32_0 = arith.constant 0 : i32
    %c0_i32_1 = arith.constant 0 : i32
    return %c0_i32, %c0_i32_0 : i32, i32
  }
  func.func @transform_4(%arg0: i32) -> (i32, i32) {
    %c0_i32 = arith.constant 0 : i32
    %c0_i32_0 = arith.constant 0 : i32
    %c0_i32_1 = arith.constant 0 : i32
    return %c0_i32, %c0_i32_0 : i32, i32
  }
  func.func @transform_5(%arg0: i32) -> (i32, i32) {
    %c0_i32 = arith.constant 0 : i32
    %c0_i32_0 = arith.constant 0 : i32
    %c0_i32_1 = arith.constant 0 : i32
    return %c0_i32, %c0_i32_0 : i32, i32
  }
  func.func @transform_6(%arg0: i32) -> (i32, i32) {
    %c0_i32 = arith.constant 0 : i32
    %c0_i32_0 = arith.constant 0 : i32
    %c0_i32_1 = arith.constant 0 : i32
    return %c0_i32, %c0_i32_0 : i32, i32
  }
  func.func @transform_7(%arg0: i32) -> (i32, i32) {
    %c0_i32 = arith.constant 0 : i32
    %c0_i32_0 = arith.constant 0 : i32
    %c0_i32_1 = arith.constant 0 : i32
    return %c0_i32, %c0_i32_0 : i32, i32
  }
  func.func @transform_8(%arg0: i32) -> (i32, i32) {
    %c0_i32 = arith.constant 0 : i32
    %c0_i32_0 = arith.constant 0 : i32
    %c0_i32_1 = arith.constant 0 : i32
    return %c0_i32, %c0_i32_0 : i32, i32
  }
  func.func @transform_9(%arg0: i32) -> (i32, i32) {
    %c0_i32 = arith.constant 0 : i32
    %c0_i32_0 = arith.constant 0 : i32
    %c0_i32_1 = arith.constant 0 : i32
    return %c0_i32, %c0_i32_0 : i32, i32
  }
  func.func @transform_10(%arg0: i32) -> (i32, i32) {
    %c0_i32 = arith.constant 0 : i32
    %c0_i32_0 = arith.constant 0 : i32
    %c0_i32_1 = arith.constant 0 : i32
    return %c0_i32, %c0_i32_0 : i32, i32
  }
  func.func @transform_11(%arg0: i32) -> (i32, i32) {
    %c0_i32 = arith.constant 0 : i32
    %c0_i32_0 = arith.constant 0 : i32
    return %arg0, %c0_i32 : i32, i32
  }
}

</mosaic_0001>

<bundles_post_ra>
// kernel: tpu_custom_call.1
= control target key start
LH: loop header
LB: loop body
LE: loop exit
PB: predicated region body
PF: predicated region fallthrough
CT: control target
= control target key end

     0   :  { %16 = vsyncpa [#allocation3], 0  ;;  %s3095_s0 = inlined_call_operand.vmem [shape: bf16[128,128], index: 0, kind: input, shape index: {}]   ;;  %s3096_s1 = inlined_call_operand.vmem [shape: bf16[128,128], index: 1, kind: input, shape index: {}]   ;;  %s3097_s2 = inlined_call_operand.vmem [shape: bf16[128,128], index: 2, kind: input, shape index: {}]   ;;  %s3098_s3 = inlined_call_operand.vmem [shape: bf16[128,128], index: 3, kind: input, shape index: {}]   ;;  %s3099_s4 = inlined_call_operand.vmem [shape: f32[128,1], index: 4, kind: input, shape index: {}]   ;;  %s3100_s5 = inlined_call_operand.vmem [shape: bf16[128,128], index: 5, kind: input, shape index: {}]   ;;  %s3101_s6 = inlined_call_operand.vmem [shape: f32[128,1], index: 6, kind: input, shape index: {}]   ;;  %s3102_s7 = inlined_call_operand.vmem [shape: bf16[128,128], index: 7, kind: input, shape index: {}]   ;;  %s3103_s8 = inlined_call_operand.vmem [shape: f32[128,1], index: 8, kind: input, shape index: {}]   ;;  %s3104_s9 = inlined_call_operand.hbm [shape: bf16[128,128], index: 9, kind: input, shape index: {}]   ;;  %s3105_s10 = inlined_call_operand.vmem [shape: f32[1,128], index: 10, kind: input, shape index: {}]   ;;  %s3106_s11 = inlined_call_operand.hbm [shape: f32[128,128], index: 11, kind: output, shape index: {}]  }
   0x1   :  { %17 = vsyncpa [#allocation4], 0  ;;  %s2459_s17 = smov [#allocation2]   ;;  %s2411_s21 = scalar_lea.hbm %s3104_s9, 1024 }
   0x2   :  { %s41_s18 = sshll.u32 %s2459_s17, 4  ;;  %p2412_p0 = scmp.ne.s32.totalorder %s3104_s9, %s2411_s21  ;;  %s42_s18 = int_to_ptr.vmem [resolvable:$true] %s41_s18 }
   0x3   :  { %p2415_p1 = scmp.lt.u32.totalorder %s2411_s21, %s3104_s9 }
   0x5   :  { %p2417_p2 = pnand %p2415_p1, %p2412_p0 }
   0x7   :  { %2420 = shalt.err (!%p2417_p2)
}
   0x8   :  { %s2421_s26 = scalar_lea.vmem %s42_s18, 1024  ;;  %p2426_p4 = scmp.lt.s32.totalorder %s42_s18, %s42_s18 }
   0x9   :  { %p2422_p3 = scmp.ne.s32.totalorder %s42_s18, %s2421_s26  ;;  %p2427_p5 = scmp.lt.s32.totalorder %s2421_s26, %s2421_s26 }
   0xb   :  { %p2428_p6 = por %p2427_p5, %p2426_p4 }
   0xd   :  { %p2429_p7 = pnand %p2428_p6, %p2422_p3 }
   0xf   :  { %2432 = shalt.err (!%p2429_p7)
}
  0x10   :  { %s2460_s27 = smov 64   ;;  %s2461_s28 = smov 4  }
  0x11   :  { %47 = dma.hbm_to_vmem [thread:$0]  %s3104_s9, 1024, %s42_s18, [#allocation3], %s2460_s27, %s2460_s27, %s2461_s28  }
  0x12   :  { %2455 = dma.done.wait [#allocation3], 1024  }
  0x13   :  { %2456 = vsyncadd [#allocation3], 4294966272  ;;  %v2462_v0 = vmov 0   ;;  %v2337_v1 = vld [vmem:[%s3095_s0] sm:$0xff]   ;;  %v2339_v3 = vld [vmem:[%s3095_s0 + $0x8] sm:$0xff]   ;;  %v950_v53 = vlaneseq }
  0x14   :  { %2335 = vset.pattern.permute.xlu0 %v2462_v0  ;;  %2336 = vset.pattern.permute.xlu1 %v2462_v0  ;;  %v2338_v2 = vld [vmem:[%s3096_s1] sm:$0xff]   ;;  %v2340_v4 = vld [vmem:[%s3096_s1 + $0x8] sm:$0xff]   ;;  %v2341_v5 = vld [vmem:[%s3095_s0 + $0x10] sm:$0xff]   ;;  %v2463_v51 = vmov 1966171168  }
  0x15   :  { %2198 = vmatprep.subr.bf16.mxu0 %v2337_v1  ;;  %2230 = vmatprep.subr.bf16.mxu1 %v2338_v2  ;;  %v2342_v6 = vld [vmem:[%s3096_s1 + $0x10] sm:$0xff]   ;;  %v2343_v7 = vld [vmem:[%s3095_s0 + $0x18] sm:$0xff]   ;;  %v2345_v9 = vld [vmem:[%s3095_s0 + $0x20] sm:$0xff]   ;;  %v948_v52 = vunpack.c.l.s4 %v2463_v51  ;;  %v951_v57 = vshrl.u32 %v950_v53, 7 }
  0x16   :  { %2199 = vmatpush3.bf16.msra.mxu0 %v2337_v1  ;;  %2231 = vmatpush3.bf16.msra.mxu1 %v2338_v2  ;;  %v2344_v8 = vld [vmem:[%s3096_s1 + $0x18] sm:$0xff]   ;;  %v2346_v10 = vld [vmem:[%s3096_s1 + $0x20] sm:$0xff]   ;;  %v2347_v11 = vld [vmem:[%s3095_s0 + $0x28] sm:$0xff]  }
  0x17   :  { %2200 = vmatprep.subr.bf16.mxu0 %v2339_v3  ;;  %2232 = vmatprep.subr.bf16.mxu1 %v2340_v4  ;;  %v2348_v12 = vld [vmem:[%s3096_s1 + $0x28] sm:$0xff]   ;;  %v2353_v13 = vld [vmem:[%s3098_s3] sm:$0xff]   ;;  %v2349_v15 = vld [vmem:[%s3095_s0 + $0x30] sm:$0xff]   ;;  %v949_v56 = vunpack.c.0.s8 %v948_v52 }
  0x18   :  { %v2354_v14 = vld [vmem:[%s3100_s5] sm:$0xff]   ;;  %2214 = vmatprep.mubr.bf16.mxu0 %v2353_v13  ;;  %v2350_v16 = vld [vmem:[%s3096_s1 + $0x30] sm:$0xff]   ;;  %v2351_v17 = vld [vmem:[%s3095_s0 + $0x38] sm:$0xff]  }
  0x19   :  { %2246 = vmatprep.mubr.bf16.mxu1 %v2354_v14  ;;  %v2352_v18 = vld [vmem:[%s3096_s1 + $0x38] sm:$0xff]   ;;  %v2357_v19 = vld [vmem:[%s3097_s2] sm:$0xff]   ;;  %v2355_v20 = vld [vmem:[%s3098_s3 + $0x8] sm:$0xff]   ;;  %v2692_v2 = vsub.s32 %v949_v56, %v951_v57 }
  0x1a   :  { %2201 = vmatpush3.bf16.msra.mxu0 %v2339_v3  ;;  %2233 = vmatpush3.bf16.msra.mxu1 %v2340_v4  ;;  %v2356_v21 = vld [vmem:[%s3100_s5 + $0x8] sm:$0xff]   ;;  %v2359_v23 = vld [vmem:[%s3098_s3 + $0x10] sm:$0xff]   ;;  %v383_v25 = vld [vmem:[%s3101_s6] sm:$0xff] }
  0x1b   :  { %2202 = vmatprep.subr.bf16.mxu0 %v2341_v5  ;;  %2234 = vmatprep.subr.bf16.mxu1 %v2342_v6  ;;  %v2358_v22 = vld [vmem:[%s3097_s2 + $0x8] sm:$0xff]   ;;  %v2361_v24 = vld [vmem:[%s3097_s2 + $0x10] sm:$0xff]   ;;  %v2360_v27 = vld [vmem:[%s3098_s3 + $0x18] sm:$0xff]  }
  0x1c   :  { %v385_v26 = vld [vmem:[%s3101_s6 + $0x10] sm:$0xff]  ;;  %401 = vperm.xlu0 %2335, %v383_v25   ;;  %v384_v28 = vld [vmem:[%s3101_s6 + $0x8] sm:$0xff]  ;;  %v386_v29 = vld [vmem:[%s3101_s6 + $0x18] sm:$0xff] }
  0x1d   :  { %411 = vperm.xlu1 %2336, %v385_v26   ;;  %v2362_v30 = vld [vmem:[%s3097_s2 + $0x18] sm:$0xff]   ;;  %v2363_v31 = vld [vmem:[%s3098_s3 + $0x20] sm:$0xff]   ;;  %v87_v33 = vld [vmem:[%s3099_s4 + $0x8] sm:$0xff] }
  0x1e   :  { %2203 = vmatpush3.bf16.msra.mxu0 %v2341_v5  ;;  %2235 = vmatpush3.bf16.msra.mxu1 %v2342_v6  ;;  %v86_v32 = vld [vmem:[%s3099_s4] sm:$0xff]  ;;  %v2364_v35 = vld [vmem:[%s3098_s3 + $0x28] sm:$0xff]   ;;  %v88_v36 = vld [vmem:[%s3099_s4 + $0x10] sm:$0xff] }
  0x1f   :  { %2204 = vmatprep.subr.bf16.mxu0 %v2343_v7  ;;  %2236 = vmatprep.subr.bf16.mxu1 %v2344_v8  ;;  %v2365_v34 = vld [vmem:[%s3097_s2 + $0x20] sm:$0xff]   ;;  %v89_v37 = vld [vmem:[%s3099_s4 + $0x18] sm:$0xff]  ;;  %v2367_v38 = vld [vmem:[%s3098_s3 + $0x30] sm:$0xff]  }
  0x20   :  { %406 = vperm.xlu0 %2335, %v384_v28   ;;  %v2366_v39 = vld [vmem:[%s3097_s2 + $0x28] sm:$0xff]   ;;  %v680_v40 = vld [vmem:[%s3103_s8] sm:$0xff]  ;;  %v2369_v42 = vld [vmem:[%s3097_s2 + $0x30] sm:$0xff]  }
  0x21   :  { %416 = vperm.xlu1 %2336, %v386_v29   ;;  %v681_v41 = vld [vmem:[%s3103_s8 + $0x8] sm:$0xff]  ;;  %v2368_v43 = vld [vmem:[%s3098_s3 + $0x38] sm:$0xff]   ;;  %v682_v44 = vld [vmem:[%s3103_s8 + $0x10] sm:$0xff] }
  0x22   :  { %2205 = vmatpush3.bf16.msra.mxu0 %v2343_v7  ;;  %2237 = vmatpush3.bf16.msra.mxu1 %v2344_v8  ;;  %v683_v45 = vld [vmem:[%s3103_s8 + $0x18] sm:$0xff]  ;;  %v2371_v46 = vld [vmem:[%s3102_s7] sm:$0xff]   ;;  %v2372_v48 = vld [vmem:[%s3102_s7 + $0x8] sm:$0xff]  }
  0x23   :  { %2206 = vmatprep.subr.bf16.mxu0 %v2345_v9  ;;  %2238 = vmatprep.subr.bf16.mxu1 %v2346_v10  ;;  %v2370_v47 = vld [vmem:[%s3097_s2 + $0x38] sm:$0xff]   ;;  %v2373_v58 = vld [vmem:[#allocation2] sm:$0xff]   ;;  %v2374_v59 = vld [vmem:[#allocation2 + $0x8] sm:$0xff]  }
  0x24   :  { %104 = vperm.xlu0 %2335, %v86_v32   ;;  %v2375_v60 = vld [vmem:[%s3100_s5 + $0x10] sm:$0xff]   ;;  %v2376_v61 = vld [vmem:[%s3100_s5 + $0x18] sm:$0xff]   ;;  %v2379_v62 = vld [vmem:[%s3100_s5 + $0x20] sm:$0xff]  }
  0x25   :  { %109 = vperm.xlu1 %2336, %v87_v33   ;;  %v2377_v3 = vld [vmem:[#allocation2 + $0x10] sm:$0xff]  }
  0x26   :  { %2207 = vmatpush3.bf16.msra.mxu0 %v2345_v9  ;;  %2239 = vmatpush3.bf16.msra.mxu1 %v2346_v10  ;;  %v2696_v9 = vsub.s32 0, %v951_v57 }
  0x27   :  { %2208 = vmatprep.subr.bf16.mxu0 %v2347_v11  ;;  %2240 = vmatprep.subr.bf16.mxu1 %v2348_v12 }
  0x28   :  { %114 = vperm.xlu0 %2335, %v88_v36  }
  0x29   :  { %119 = vperm.xlu1 %2336, %v89_v37   ;;  %v2381_v37 = vld [vmem:[#allocation2 + $0x20] sm:$0xff]  }
  0x2a   :  { %2209 = vmatpush3.bf16.msra.mxu0 %v2347_v11  ;;  %2241 = vmatpush3.bf16.msra.mxu1 %v2348_v12 }
  0x2b   :  { %2210 = vmatprep.subr.bf16.mxu0 %v2349_v15  ;;  %2242 = vmatprep.subr.bf16.mxu1 %v2350_v16 }
  0x2c   :  { %698 = vperm.xlu0 %2335, %v680_v40  }
  0x2d   :  { %703 = vperm.xlu1 %2336, %v681_v41  }
  0x2e   :  { %2211 = vmatpush3.bf16.msra.mxu0 %v2349_v15  ;;  %2243 = vmatpush3.bf16.msra.mxu1 %v2350_v16 }
  0x2f   :  { %2212 = vmatprep.subr.bf16.mxu0 %v2351_v17  ;;  %2244 = vmatprep.subr.bf16.mxu1 %v2352_v18 }
  0x30   :  { %708 = vperm.xlu0 %2335, %v682_v44  }
  0x31   :  { %713 = vperm.xlu1 %2336, %v683_v45  }
  0x32   :  { %2213 = vmatpush3.bf16.msra.mxu0 %v2351_v17  ;;  %2245 = vmatpush3.bf16.msra.mxu1 %v2352_v18  ;;  %v2378_v18 = vld [vmem:[#allocation2 + $0x18] sm:$0xff]  }
  0x33   :  { %2262 = vmatprep.subr.bf16.mxu0 %v2357_v19  ;;  %2294 = vmatprep.subr.bf16.mxu1 %v2373_v58 }
  0x35   :  { %2215 = vmatmul.mubr.bf16.vlgmr.msra.gmra.mrb[0].mxu0 %v2355_v20  ;;  %2247 = vmatmul.mubr.bf16.vlgmr.msra.gmra.mrb[0].mxu1 %v2356_v21 }
  0x36   :  { %2263 = vmatpush3.bf16.msra.mxu0 %v2357_v19  ;;  %2218 = vmatprep.mubr.bf16.mxu0 %v2359_v23  ;;  %v2380_v23 = vld [vmem:[%s3100_s5 + $0x28] sm:$0xff]  }
  0x37   :  { %2264 = vmatprep.subr.bf16.mxu0 %v2358_v22  ;;  %2250 = vmatprep.mubr.bf16.mxu1 %v2375_v60 }
  0x38   :  { %2295 = vmatpush3.bf16.msra.mxu1 %v2373_v58 }
  0x39   :  { %2296 = vmatprep.subr.bf16.mxu1 %v2374_v59 }
  0x3a   :  { %2265 = vmatpush3.bf16.msra.mxu0 %v2358_v22 }
  0x3b   :  { %2266 = vmatprep.subr.bf16.mxu0 %v2361_v24 }
  0x3c   :  { %2297 = vmatpush3.bf16.msra.mxu1 %v2374_v59 }
  0x3d   :  { %2219 = vmatmul.mubr.bf16.gmra.mrb[4].mxu0 %v2360_v27  ;;  %2251 = vmatmul.mubr.bf16.gmra.mrb[4].mxu1 %v2376_v61 }
  0x3e   :  { %2267 = vmatpush3.bf16.msra.mxu0 %v2361_v24  ;;  %2222 = vmatprep.mubr.bf16.mxu0 %v2363_v31 }
  0x3f   :  { %2268 = vmatprep.subr.bf16.mxu0 %v2362_v30  ;;  %2254 = vmatprep.mubr.bf16.mxu1 %v2379_v62 }
  0x40   :  { %2298 = vmatprep.subr.bf16.mxu1 %v2377_v3 }
  0x41   :  { %2299 = vmatpush3.bf16.msra.mxu1 %v2377_v3 }
  0x42   :  { %2269 = vmatpush3.bf16.msra.mxu0 %v2362_v30  ;;  %2300 = vmatprep.subr.bf16.mxu1 %v2378_v18 }
  0x43   :  { %2270 = vmatprep.subr.bf16.mxu0 %v2365_v34 }
  0x45   :  { %2223 = vmatmul.mubr.bf16.gmra.mrb[8].mxu0 %v2364_v35  ;;  %2255 = vmatmul.mubr.bf16.gmra.mrb[8].mxu1 %v2380_v23 }
  0x46   :  { %2271 = vmatpush3.bf16.msra.mxu0 %v2365_v34  ;;  %2226 = vmatprep.mubr.bf16.mxu0 %v2367_v38 }
  0x47   :  { %2272 = vmatprep.subr.bf16.mxu0 %v2366_v39  ;;  %2301 = vmatpush3.bf16.msra.mxu1 %v2378_v18 }
  0x48   :  { %2302 = vmatprep.subr.bf16.mxu1 %v2381_v37 }
  0x4a   :  { %2273 = vmatpush3.bf16.msra.mxu0 %v2366_v39 }
  0x4b   :  { %2274 = vmatprep.subr.bf16.mxu0 %v2369_v42  ;;  %2303 = vmatpush3.bf16.msra.mxu1 %v2381_v37 }
  0x4d   :  { %2227 = vmatmul.mubr.bf16.gmra.mrb[12].mxu0 %v2368_v43 }
  0x4e   :  { %2275 = vmatpush3.bf16.msra.mxu0 %v2369_v42  ;;  %2278 = vmatprep.mubr.bf16.mxu0 %v2371_v46 }
  0x4f   :  { %2276 = vmatprep.subr.bf16.mxu0 %v2370_v47 }
  0x52   :  { %2277 = vmatpush3.bf16.msra.mxu0 %v2370_v47 }
  0x55   :  { %2279 = vmatmul.mubr.bf16.vlgmr.msra.gmra.mrb[16].mxu0 %v2372_v48 }
  0x9b   :  { %v402_v49 = vpop.permute.xlu0 %401 }
  0x9c   :  { %v412_v54 = vpop.permute.xlu1 %411 }
  0x9f   :  { %v407_v50 = vpop.permute.xlu0 %406 }
  0xa0   :  { %v417_v63 = vpop.permute.xlu1 %416 }
  0xa3   :  { %v105_v55 = vpop.permute.xlu0 %104 }
  0xa4   :  { %v2748_v61 = vpop.permute.xlu1 %109 }
  0xa7   :  { %v115_v0 = vpop.permute.xlu0 %114 }
 0x108   :  { %v2216_v1 = vpop.f32.mrb[0].mxu0  ;;  %v2248_v4 = vpop.f32.mrb[0].mxu1 }
 0x109   :  { %v300_v5 = vpop.f32.mrb[1].mxu0  ;;  %v606_v6 = vadd.f32 %v2248_v4, %v412_v54  ;;  %v597_v7 = vpop.f32.mrb[1].mxu1  ;;  %v2700_v13 = vadd.f32 %v2216_v1, %v115_v0 }
 0x10a   :  { %v2694_v8 = vpop.f32.mrb[2].mxu0  ;;  %v598_v10 = vadd.f32 %v597_v7, %v402_v49  ;;  %v2249_v11 = vpop.f32.mrb[2].mxu1  ;;  %v2705_v19 = vadd.f32 %v300_v5, %v105_v55 }
 0x10b   :  { %v2698_v12 = vpop.f32.mrb[3].mxu0  ;;  %v1158_v14 = vcombine.high %v606_v6, %v606_v6  ;;  %v1165_v15 = vrot.slane %v606_v6, %v2692_v2  ;;  %v2703_v16 = vadd.f32 %v2249_v11, %v417_v63  ;;  %v600_v17 = vpop.f32.mrb[3].mxu1 }
 0x10c   :  { %v946_v20 = vcombine.high %v598_v10, %v598_v10  ;;  %v953_v21 = vrot.slane %v598_v10, %v2692_v2  ;;  %v2708_v22 = vadd.f32 %v600_v17, %v407_v50 }
 0x10d   :  { %v1172_v24 = vrot.slane %v1158_v14, %v2692_v2  ;;  %v1173_v25 = vcombine.high %v1165_v15, %v1165_v15  ;;  %v1181_v26 = vrot.slane %v1165_v15, %v2692_v2  ;;  %v1264_v27 = vcombine.high %v2703_v16, %v2703_v16 }
 0x10e   :  { %v960_v28 = vrot.slane %v946_v20, %v2692_v2  ;;  %v961_v29 = vcombine.high %v953_v21, %v953_v21  ;;  %v969_v30 = vrot.slane %v953_v21, %v2692_v2  ;;  %v2721_v31 = vrot.slane %v2703_v16, %v2692_v2 }
 0x10f   :  { %v1174_v32 = vcombine.high %v1172_v24, %v1172_v24  ;;  %v1188_v33 = vrot.slane %v1172_v24, %v2692_v2  ;;  %v1195_v34 = vrot.slane %v1173_v25, %v2692_v2  ;;  %v1203_v35 = vcombine.high %v1181_v26, %v1181_v26 }
 0x110   :  { %v2220_v36 = vpop.f32.mrb[4].mxu0  ;;  %v1210_v38 = vrot.slane %v1181_v26, %v2696_v9  ;;  %v962_v39 = vcombine.high %v960_v28, %v960_v28  ;;  %v976_v40 = vrot.slane %v960_v28, %v2692_v2  ;;  %v983_v41 = vrot.slane %v961_v29, %v2692_v2 }
 0x111   :  { %v316_v42 = vpop.f32.mrb[5].mxu0  ;;  %v1202_v43 = vrot.slane %v1174_v32, %v2692_v2  ;;  %v1204_v44 = vcombine.high %v1188_v33, %v1188_v33  ;;  %v1205_v45 = vcombine.high %v1195_v34, %v1195_v34  ;;  %v1214_v46 = vrot.slane %v1195_v34, %v2696_v9 }
 0x112   :  { %v2221_v47 = vpop.f32.mrb[6].mxu0  ;;  %v1218_v48 = vrot.slane %v1203_v35, %v2696_v9  ;;  %v1226_v49 = vrot.slane %v1188_v33, %v2696_v9  ;;  %v2733_v50 = vmul.f32 %v1210_v38, %v2700_v13  ;;  %v990_v51 = vrot.slane %v962_v39, %v2692_v2  ;;  %v120_v35 = vpop.permute.xlu1 %119 }
 0x113   :  { %v318_v52 = vpop.f32.mrb[7].mxu0  ;;  %v1206_v53 = vcombine.high %v1202_v43, %v1202_v43  ;;  %v1222_v54 = vrot.slane %v1205_v45, %v2696_v9  ;;  %v1230_v55 = vrot.slane %v1202_v43, %v2696_v9  ;;  %v1234_v56 = vrot.slane %v1204_v44, %v2696_v9 }
 0x114   :  { %v2740_v57 = vmul.f32 %v1214_v46, %v2700_v13  ;;  %v2743_v58 = vmul.f32 %v1218_v48, %v2700_v13  ;;  %v2746_v59 = vmul.f32 %v1226_v49, %v2700_v13  ;;  %v991_v60 = vcombine.high %v969_v30, %v969_v30 }
 0x115   :  { %v1238_v62 = vrot.slane %v1206_v53, %v2696_v9  ;;  %v2752_v63 = vmul.f32 %v1222_v54, %v2700_v13  ;;  %v2755_v0 = vmul.f32 %v1230_v55, %v2700_v13  ;;  %v2758_v1 = vmul.f32 %v1234_v56, %v2700_v13 }
 0x116   :  { %v992_v3 = vcombine.high %v976_v40, %v976_v40  ;;  %v993_v4 = vcombine.high %v983_v41, %v983_v41  ;;  %v994_v5 = vcombine.high %v990_v51, %v990_v51  ;;  %v998_v6 = vrot.slane %v969_v30, %v2696_v9 }
 0x117   :  { %v2762_v7 = vmul.f32 %v1238_v62, %v2700_v13  ;;  %v1002_v10 = vrot.slane %v983_v41, %v2696_v9  ;;  %v1006_v11 = vrot.slane %v991_v60, %v2696_v9  ;;  %v1014_v14 = vrot.slane %v976_v40, %v2696_v9 }
 0x118   :  { %v2224_v15 = vpop.f32.mrb[8].mxu0  ;;  %v1010_v17 = vrot.slane %v993_v4, %v2696_v9  ;;  %v1018_v18 = vrot.slane %v990_v51, %v2696_v9  ;;  %v1022_v20 = vrot.slane %v992_v3, %v2696_v9  ;;  %v1026_v21 = vrot.slane %v994_v5, %v2696_v9 }
 0x119   :  { %v328_v23 = vpop.f32.mrb[9].mxu0  ;;  %v2772_v24 = vmul.f32 %v998_v6, %v2705_v19  ;;  %v2775_v13 = vmul.f32 %v1002_v10, %v2705_v19  ;;  %v2778_v25 = vmul.f32 %v1006_v11, %v2705_v19  ;;  %v2781_v26 = vmul.f32 %v1014_v14, %v2705_v19 }
 0x11a   :  { %v2225_v28 = vpop.f32.mrb[10].mxu0  ;;  %v2784_v29 = vmul.f32 %v1010_v17, %v2705_v19  ;;  %v2787_v30 = vmul.f32 %v1018_v18, %v2705_v19  ;;  %v2790_v32 = vmul.f32 %v1022_v20, %v2705_v19  ;;  %v2793_v33 = vmul.f32 %v1026_v21, %v2705_v19 }
 0x11b   :  { %v330_v34 = vpop.f32.mrb[11].mxu0  ;;  %v1278_v36 = vrot.slane %v1264_v27, %v2692_v2  ;;  %v1279_v37 = vcombine.high %v2721_v31, %v2721_v31  ;;  %v1287_v38 = vrot.slane %v2721_v31, %v2692_v2  ;;  %v1052_v39 = vcombine.high %v2708_v22, %v2708_v22 }
 0x11c   :  { %v312_v40 = vadd.f32 %v2694_v8, %v120_v35  ;;  %v1059_v19 = vrot.slane %v2708_v22, %v2692_v2 }
 0x11d   :  { %v1280_v41 = vcombine.high %v1278_v36, %v1278_v36  ;;  %v1294_v42 = vrot.slane %v1278_v36, %v2692_v2  ;;  %v1301_v16 = vrot.slane %v1279_v37, %v2692_v2  ;;  %v1309_v27 = vcombine.high %v1287_v38, %v1287_v38 }
 0x11e   :  { %v1316_v43 = vrot.slane %v1287_v38, %v2696_v9  ;;  %v1066_v44 = vrot.slane %v1052_v39, %v2692_v2  ;;  %v1067_v45 = vcombine.high %v1059_v19, %v1059_v19  ;;  %v1075_v31 = vrot.slane %v1059_v19, %v2692_v2 }
 0x11f   :  { %v1308_v46 = vrot.slane %v1280_v41, %v2692_v2  ;;  %v1310_v47 = vcombine.high %v1294_v42, %v1294_v42  ;;  %v1311_v8 = vcombine.high %v1301_v16, %v1301_v16  ;;  %v1320_v48 = vrot.slane %v1301_v16, %v2696_v9 }
 0x120   :  { %v2228_v22 = vpop.f32.mrb[12].mxu0  ;;  %v1324_v49 = vrot.slane %v1309_v27, %v2696_v9  ;;  %v1332_v51 = vrot.slane %v1294_v42, %v2696_v9  ;;  %v1353_v52 = vmul.f32 %v1316_v43, %v312_v40  ;;  %v1068_v53 = vcombine.high %v1066_v44, %v1066_v44 }
 0x121   :  { %v340_v54 = vpop.f32.mrb[13].mxu0  ;;  %v1312_v55 = vcombine.high %v1308_v46, %v1308_v46  ;;  %v1328_v56 = vrot.slane %v1311_v8, %v2696_v9  ;;  %v1336_v60 = vrot.slane %v1308_v46, %v2696_v9  ;;  %v1340_v62 = vrot.slane %v1310_v47, %v2696_v9 }
 0x122   :  { %v2229_v3 = vpop.f32.mrb[14].mxu0  ;;  %v1354_v4 = vmul.f32 %v1320_v48, %v312_v40  ;;  %v1355_v5 = vmul.f32 %v1324_v49, %v312_v40  ;;  %v1357_v6 = vmul.f32 %v1332_v51, %v312_v40  ;;  %v1082_v10 = vrot.slane %v1066_v44, %v2692_v2  ;;  %v699_v44 = vpop.permute.xlu0 %698 }
 0x123   :  { %v342_v11 = vpop.f32.mrb[15].mxu0  ;;  %v1344_v14 = vrot.slane %v1312_v55, %v2696_v9  ;;  %v1356_v15 = vmul.f32 %v1328_v56, %v312_v40  ;;  %v1358_v17 = vmul.f32 %v1336_v60, %v312_v40  ;;  %v1359_v18 = vmul.f32 %v1340_v62, %v312_v40 }
 0x124   :  { %v1089_v20 = vrot.slane %v1067_v45, %v2692_v2  ;;  %v1096_v21 = vrot.slane %v1068_v53, %v2692_v2  ;;  %v1097_v23 = vcombine.high %v1075_v31, %v1075_v31  ;;  %v1098_v28 = vcombine.high %v1082_v10, %v1082_v10 }
 0x125   :  { %v1360_v34 = vmul.f32 %v1344_v14, %v312_v40  ;;  %v1104_v35 = vrot.slane %v1075_v31, %v2696_v9  ;;  %v1120_v36 = vrot.slane %v1082_v10, %v2696_v9  ;;  %v304_v37 = vadd.f32 %v2698_v12, %v2748_v61 }
 0x126   :  { %v1099_v38 = vcombine.high %v1089_v20, %v1089_v20  ;;  %v1100_v39 = vcombine.high %v1096_v21, %v1096_v21  ;;  %v1108_v19 = vrot.slane %v1089_v20, %v2696_v9  ;;  %v1112_v41 = vrot.slane %v1097_v23, %v2696_v9 }
 0x127   :  { %v1124_v42 = vrot.slane %v1096_v21, %v2696_v9  ;;  %v1128_v16 = vrot.slane %v1098_v28, %v2696_v9  ;;  %v1141_v27 = vmul.f32 %v1104_v35, %v304_v37  ;;  %v1145_v43 = vmul.f32 %v1120_v36, %v304_v37  ;;  %v2850_v21 = vpop.permute.xlu1 %703 }
 0x128   :  { %v2280_v40 = vpop.f32.mrb[16].mxu0  ;;  %v1116_v45 = vrot.slane %v1099_v38, %v2696_v9  ;;  %v1132_v31 = vrot.slane %v1100_v39, %v2696_v9  ;;  %v1142_v46 = vmul.f32 %v1108_v19, %v304_v37  ;;  %v1143_v12 = vmul.f32 %v1112_v41, %v304_v37 }
 0x129   :  { %v894_v61 = vpop.f32.mrb[17].mxu0  ;;  %v1146_v47 = vmul.f32 %v1124_v42, %v304_v37  ;;  %v1147_v8 = vmul.f32 %v1128_v16, %v304_v37  ;;  %v1149_v48 = vadd.f32 %v1141_v27, %v2772_v24  ;;  %v1153_v22 = vadd.f32 %v1145_v43, %v2781_v26 }
 0x12a   :  { %v2281_v49 = vpop.f32.mrb[18].mxu0  ;;  %v1144_v51 = vmul.f32 %v1116_v45, %v304_v37  ;;  %v1148_v53 = vmul.f32 %v1132_v31, %v304_v37  ;;  %v1150_v54 = vadd.f32 %v1142_v46, %v2775_v13  ;;  %v1151_v55 = vadd.f32 %v1143_v12, %v2778_v25 }
 0x12b   :  { %v2838_v56 = vpop.f32.mrb[19].mxu0  ;;  %v1154_v60 = vadd.f32 %v1146_v47, %v2787_v30  ;;  %v1155_v62 = vadd.f32 %v1147_v8, %v2790_v32  ;;  %v1255_v3 = vadd.f32 %v2733_v50, %v1149_v48  ;;  %v1259_v10 = vadd.f32 %v2746_v59, %v1153_v22  ;;  %v709_v32 = vpop.permute.xlu0 %708 }
 0x12c   :  { %v1152_v24 = vadd.f32 %v1144_v51, %v2784_v29  ;;  %v1156_v26 = vadd.f32 %v1148_v53, %v2793_v33  ;;  %v1256_v11 = vadd.f32 %v2740_v57, %v1150_v54  ;;  %v1257_v13 = vadd.f32 %v2743_v58, %v1151_v55 }
 0x12d   :  { %v1260_v25 = vadd.f32 %v2755_v0, %v1154_v60  ;;  %v1261_v14 = vadd.f32 %v2758_v1, %v1155_v62  ;;  %v1361_v20 = vadd.f32 %v1353_v52, %v1255_v3  ;;  %v1365_v30 = vadd.f32 %v1357_v6, %v1259_v10 }
 0x12e   :  { %v1258_v50 = vadd.f32 %v2752_v63, %v1152_v24  ;;  %v1262_v59 = vadd.f32 %v2762_v7, %v1156_v26  ;;  %v1362_v29 = vadd.f32 %v1354_v4, %v1256_v11  ;;  %v1363_v23 = vadd.f32 %v1355_v5, %v1257_v13 }
 0x12f   :  { %v1366_v33 = vadd.f32 %v1358_v17, %v1260_v25  ;;  %v1367_v28 = vadd.f32 %v1359_v18, %v1261_v14  ;;  %v1369_v57 = vmax.f32 %v1361_v20, %v1365_v30  ;;  %v903_v35 = vadd.f32 %v2280_v40, %v709_v32 }
 0x130   :  { %v1364_v58 = vadd.f32 %v1356_v15, %v1258_v50  ;;  %v1368_v36 = vadd.f32 %v1360_v34, %v1262_v59  ;;  %v2854_v0 = vadd.f32 %v894_v61, %v699_v44  ;;  %v714_v15 = vpop.permute.xlu1 %713 }
 0x131   :  { %v1370_v1 = vmax.f32 %v1362_v29, %v1366_v33  ;;  %v1371_v52 = vmax.f32 %v1363_v23, %v1367_v28  ;;  %v1627_v6 = vcombine.high %v903_v35, %v903_v35  ;;  %v1634_v37 = vrot.slane %v903_v35, %v2692_v2 }
 0x132   :  { %v1372_v38 = vmax.f32 %v1364_v58, %v1368_v36  ;;  %v1417_v63 = vcombine.high %v2854_v0, %v2854_v0  ;;  %v906_v42 = vadd.f32 %v2281_v49, %v714_v15 }
 0x133   :  { %v1373_v7 = vmax.f32 %v1369_v57, %v1370_v1  ;;  %v1641_v4 = vrot.slane %v1627_v6, %v2692_v2  ;;  %v1642_v5 = vcombine.high %v1634_v37, %v1634_v37  ;;  %v2861_v17 = vrot.slane %v1634_v37, %v2692_v2 }
 0x134   :  { %v1374_v18 = vmax.f32 %v1371_v52, %v1372_v38  ;;  %v1431_v34 = vrot.slane %v1417_v63, %v2692_v2  ;;  %v1732_v26 = vcombine.high %v906_v42, %v906_v42 }
 0x135   :  { %v1643_v39 = vcombine.high %v1641_v4, %v1641_v4  ;;  %v2865_v19 = vrot.slane %v1641_v4, %v2692_v2  ;;  %v2868_v41 = vrot.slane %v1642_v5, %v2692_v2  ;;  %v1672_v27 = vcombine.high %v2861_v17, %v2861_v17 }
 0x136   :  { %v1375_v16 = vmax.f32 %v1373_v7, %v1374_v18  ;;  %v1679_v43 = vrot.slane %v2861_v17, %v2696_v9  ;;  %v2875_v40 = vrot.slane %v1431_v34, %v2692_v2  ;;  %v1433_v55 = vcombine.high %v1431_v34, %v1431_v34 }
 0x137   :  { %v2878_v44 = vrot.slane %v1643_v39, %v2692_v2  ;;  %v1673_v45 = vcombine.high %v2865_v19, %v2865_v19  ;;  %v1674_v31 = vcombine.high %v2868_v41, %v2868_v41  ;;  %v1683_v46 = vrot.slane %v2868_v41, %v2696_v9 }
 0x138   :  { %v1382_v12 = vsub.f32 %v1367_v28, %v1375_v16  ;;  %v1383_v61 = vsub.f32 %v1368_v36, %v1375_v16  ;;  %v1376_v47 = vsub.f32 %v1361_v20, %v1375_v16  ;;  %v1377_v8 = vsub.f32 %v1362_v29, %v1375_v16 }
 0x139   :  { %v1378_v48 = vsub.f32 %v1363_v23, %v1375_v16  ;;  %v1379_v22 = vsub.f32 %v1364_v58, %v1375_v16  ;;  %v1380_v49 = vsub.f32 %v1365_v30, %v1375_v16  ;;  %v1381_v51 = vsub.f32 %v1366_v33, %v1375_v16 }
 0x13a   :  { %v1396_v53 = vmul.f32 1.442695, %v1382_v12  ;;  %v1384_v54 = vmul.f32 1.442695, %v1376_v47  ;;  %v1386_v60 = vmul.f32 1.442695, %v1377_v8  ;;  %v2887_v62 = vrot.slane %v1672_v27, %v2696_v9 }
 0x13b   :  { %v1388_v3 = vmul.f32 1.442695, %v1378_v48  ;;  %v1390_v10 = vmul.f32 1.442695, %v1379_v22  ;;  %v2890_v24 = vrot.slane %v1674_v31, %v2696_v9  ;;  %v1695_v11 = vrot.slane %v2865_v19, %v2696_v9 }
 0x13c   :  { %2393 = vpow2.f32 %v1396_v53  ;;  %v1699_v13 = vrot.slane %v2878_v44, %v2696_v9  ;;  %v2897_v25 = vrot.slane %v1673_v45, %v2696_v9  ;;  %v1392_v14 = vmul.f32 1.442695, %v1380_v49 }
 0x13d   :  { %2395 = vpow2.f32 %v1384_v54  ;;  %v2900_v20 = vrot.slane %v1433_v55, %v2692_v2  ;;  %v1394_v30 = vmul.f32 1.442695, %v1381_v51  ;;  %v1398_v32 = vmul.f32 1.442695, %v1383_v61 }
 0x13e   :  { %2397 = vpow2.f32 %v1386_v60  ;;  %v1463_v50 = vcombine.high %v2875_v40, %v2875_v40  ;;  %v1739_v29 = vrot.slane %v906_v42, %v2692_v2  ;;  %v1746_v23 = vrot.slane %v1732_v26, %v2692_v2 }
 0x13f   :  { %2399 = vpow2.f32 %v1388_v3  ;;  %v1675_v33 = vcombine.high %v2878_v44, %v2878_v44  ;;  %v898_v28 = vadd.f32 %v2838_v56, %v2850_v21  ;;  %v1465_v57 = vcombine.high %v2900_v20, %v2900_v20 }
 0x140   :  { %2401 = vpow2.f32 %v1390_v10  ;;  %v1747_v35 = vcombine.high %v1739_v29, %v1739_v29  ;;  %v1748_v58 = vcombine.high %v1746_v23, %v1746_v23  ;;  %v2915_v36 = vrot.slane %v1739_v29, %v2692_v2 }
 0x141   :  { %2403 = vpow2.f32 %v1392_v14  ;;  %v2918_v1 = vrot.slane %v1746_v23, %v2692_v2  ;;  %v1522_v52 = vcombine.high %v898_v28, %v898_v28  ;;  %v1529_v6 = vrot.slane %v898_v28, %v2692_v2 }
 0x142   :  { %2405 = vpow2.f32 %v1394_v30  ;;  %v2922_v37 = vrot.slane %v1463_v50, %v2696_v9  ;;  %v2925_v56 = vrot.slane %v1747_v35, %v2692_v2  ;;  %v2928_v21 = vrot.slane %v1748_v58, %v2692_v2 }
 0x143   :  { %v1777_v38 = vcombine.high %v2915_v36, %v2915_v36  ;;  %v1784_v63 = vrot.slane %v2915_v36, %v2696_v9  ;;  %v1778_v7 = vcombine.high %v2918_v1, %v2918_v1  ;;  %v1800_v4 = vrot.slane %v2918_v1, %v2696_v9 }
 0x144   :  { %v1536_v5 = vrot.slane %v1522_v52, %v2692_v2  ;;  %v1537_v15 = vcombine.high %v1529_v6, %v1529_v6  ;;  %v1779_v34 = vcombine.high %v2925_v56, %v2925_v56  ;;  %v1780_v39 = vcombine.high %v2928_v21, %v2928_v21 }
 0x145   :  { %v1788_v42 = vrot.slane %v2925_v56, %v2696_v9  ;;  %v2946_v16 = vrot.slane %v1777_v38, %v2696_v9  ;;  %v1804_v45 = vrot.slane %v2928_v21, %v2696_v9  ;;  %v2951_v31 = vrot.slane %v1778_v7, %v2696_v9 }
 0x146   :  { %v2394_v18 = vpop.eup %2393  ;;  %v1538_v12 = vcombine.high %v1536_v5, %v1536_v5  ;;  %v2954_v61 = vrot.slane %v1529_v6, %v2692_v2  ;;  %v2957_v8 = vrot.slane %v1779_v34, %v2696_v9  ;;  %v2960_v48 = vrot.slane %v1536_v5, %v2692_v2 }
 0x147   :  { %v2396_v27 = vpop.eup %2395  ;;  %v2963_v22 = vrot.slane %v1537_v15, %v2692_v2  ;;  %v2966_v49 = vrot.slane %v1465_v57, %v2696_v9  ;;  %2407 = vpow2.f32 %v1398_v32  ;;  %v2986_v28 = vrot.slane %v1675_v33, %v2696_v9 }
 0x148   :  { %v2398_v47 = vpop.eup %2397  ;;  %v2969_v54 = vrot.slane %v1538_v12, %v2692_v2  ;;  %v1568_v60 = vcombine.high %v2960_v48, %v2960_v48  ;;  %v1590_v10 = vrot.slane %v2960_v48, %v2696_v9  ;;  %v2989_v57 = vrot.slane %v1780_v39, %v2696_v9 }
 0x149   :  { %v2400_v51 = vpop.eup %2399  ;;  %v1400_v53 = vadd.f32 %v2398_v47, %v2396_v27  ;;  %v1569_v3 = vcombine.high %v2963_v22, %v2963_v22  ;;  %v1424_v38 = vrot.slane %v2854_v0, %v2692_v2  ;;  %v3108_v21 = vrot.slane %v2900_v20, %v2696_v9 }
 0x14a   :  { %v2402_v55 = vpop.eup %2401  ;;  %v1570_v30 = vcombine.high %v2969_v54, %v2969_v54  ;;  %v2983_v23 = vrot.slane %v1568_v60, %v2696_v9  ;;  %v1567_v60 = vcombine.high %v2954_v61, %v2954_v61  ;;  %v3107_v1 = vrot.slane %v2969_v54, %v2696_v9 }
 0x14b   :  { %v2404_v26 = vpop.eup %2403  ;;  %v1401_v14 = vadd.f32 %v2400_v51, %v1400_v53  ;;  %v1586_v32 = vrot.slane %v1569_v3, %v2696_v9  ;;  %v1432_v34 = vcombine.high %v1424_v38, %v1424_v38  ;;  %v1440_v33 = vrot.slane %v1424_v38, %v2692_v2 }
 0x14c   :  { %v2406_v29 = vpop.eup %2405  ;;  %v2992_v58 = vrot.slane %v1570_v30, %v2696_v9  ;;  %v1485_v30 = vrot.slane %v2875_v40, %v2696_v9  ;;  %v1582_v38 = vrot.slane %v1567_v60, %v2696_v9 }
 0x14d   :  { %v1402_v35 = vadd.f32 %v2402_v55, %v1401_v14  ;;  %v1454_v12 = vrot.slane %v1432_v34, %v2692_v2  ;;  %v1462_v39 = vcombine.high %v1440_v33, %v1440_v33  ;;  %v1469_v3 = vrot.slane %v1440_v33, %v2696_v9 }
 0x14e   :  { %v1574_v2 = vrot.slane %v2954_v61, %v2696_v9 }
 0x14f   :  { %v1403_v52 = vadd.f32 %v2404_v26, %v1402_v35  ;;  %v1464_v53 = vcombine.high %v1454_v12, %v1454_v12  ;;  %v1473_v14 = vrot.slane %v1454_v12, %v2696_v9  ;;  %v1477_v0 = vrot.slane %v1462_v39, %v2696_v9 }
 0x151   :  { %v1404_v6 = vadd.f32 %v2406_v29, %v1403_v52  ;;  %v2408_v5 = vpop.eup %2407  ;;  %v1481_v52 = vrot.slane %v1464_v53, %v2696_v9 }
 0x153   :  { %v1405_v7 = vadd.f32 %v2394_v18, %v1404_v6  ;;  %v1578_v6 = vrot.slane %v2963_v22, %v2696_v9 }
 0x155   :  { %v1406_v15 = vadd.f32 %v2408_v5, %v1405_v7 }
 0x157   :  { %2409 = vrcp.f32 %v1406_v15 }
 0x161   :  { %v2410_v35 = vpop.eup %2409 }
 0x162   :  { %v1408_v7 = vmul.f32 %v2410_v35, %v2396_v27  ;;  %v1409_v15 = vmul.f32 %v2410_v35, %v2398_v47  ;;  %v1410_v34 = vmul.f32 %v2410_v35, %v2400_v51  ;;  %v1411_v33 = vmul.f32 %v2410_v35, %v2402_v55 }
 0x163   :  { %v1412_v12 = vmul.f32 %v2410_v35, %v2404_v26  ;;  %v1413_v39 = vmul.f32 %v2410_v35, %v2406_v29  ;;  %v1414_v59 = vmul.f32 %v2410_v35, %v2394_v18  ;;  %v1415_v50 = vmul.f32 %v2410_v35, %v2408_v5 }
 0x164   :  { %v1716_v40 = vmul.f32 %v1679_v43, %v1408_v7  ;;  %v1717_v61 = vmul.f32 %v1683_v46, %v1409_v15  ;;  %v1718_v22 = vmul.f32 %v2887_v62, %v1410_v34  ;;  %v1719_v53 = vmul.f32 %v2890_v24, %v1411_v33 }
 0x165   :  { %v1720_v27 = vmul.f32 %v1695_v11, %v1412_v12  ;;  %v1721_v18 = vmul.f32 %v1699_v13, %v1413_v39  ;;  %v1506_v47 = vmul.f32 %v1469_v3, %v1408_v7  ;;  %v1507_v51 = vmul.f32 %v1473_v14, %v1409_v15 }
 0x166   :  { %v1724_v17 = vadd.f32 %v1717_v61, %v1716_v40  ;;  %v1508_v43 = vmul.f32 %v1477_v0, %v1410_v34  ;;  %v1509_v55 = vmul.f32 %v1481_v52, %v1411_v33  ;;  %v1510_v26 = vmul.f32 %v1485_v30, %v1412_v12 }
 0x167   :  { %v1514_v41 = vadd.f32 %v1507_v51, %v1506_v47  ;;  %v1821_v46 = vmul.f32 %v1784_v63, %v1408_v7  ;;  %v1822_v19 = vmul.f32 %v1788_v42, %v1409_v15  ;;  %v1823_v62 = vmul.f32 %v2946_v16, %v1410_v34  ;;  %v2390_v47 = vld [vmem:[%s3102_s7 + $0x28] sm:$0xff]   ;;  %v2391_v51 = vld [vmem:[%s3102_s7 + $0x30] sm:$0xff]  }
 0x168   :  { %v1725_v24 = vadd.f32 %v1724_v17, %v1718_v22  ;;  %v1824_v44 = vmul.f32 %v2957_v8, %v1411_v33  ;;  %v1825_v11 = vmul.f32 %v1800_v4, %v1412_v12  ;;  %v1826_v13 = vmul.f32 %v1804_v45, %v1413_v39  ;;  %v2392_v17 = vld [vmem:[%s3102_s7 + $0x38] sm:$0xff]  }
 0x169   :  { %v1515_v29 = vadd.f32 %v1514_v41, %v1508_v43  ;;  %v1829_v36 = vadd.f32 %v1822_v19, %v1821_v46  ;;  %v1611_v63 = vmul.f32 %v1574_v2, %v1408_v7  ;;  %v1612_v5 = vmul.f32 %v1578_v6, %v1409_v15  ;;  %v2252_v43 = vpop.f32.mrb[4].mxu1 }
 0x16a   :  { %v1726_v60 = vadd.f32 %v1725_v24, %v1719_v53  ;;  %v1613_v56 = vmul.f32 %v1582_v38, %v1410_v34  ;;  %v1614_v42 = vmul.f32 %v1586_v32, %v1411_v33  ;;  %v1615_v16 = vmul.f32 %v1590_v10, %v1412_v12  ;;  %v2387_v53 = vld [vmem:[%s3102_s7 + $0x10] sm:$0xff]  }
 0x16b   :  { %v1830_v8 = vadd.f32 %v1829_v36, %v1823_v62  ;;  %v1616_v4 = vmul.f32 %v3107_v1, %v1413_v39  ;;  %v1619_v3 = vadd.f32 %v1612_v5, %v1611_v63  ;;  %v1511_v45 = vmul.f32 %v3108_v21, %v1413_v39  ;;  %2282 = vmatprep.mubr.bf16.mxu0 %v2387_v53 }
 0x16c   :  { %v1727_v14 = vadd.f32 %v1726_v60, %v1720_v27  ;;  %v1512_v0 = vmul.f32 %v2922_v37, %v1414_v59  ;;  %v1513_v30 = vmul.f32 %v2966_v49, %v1415_v50  ;;  %v1516_v32 = vadd.f32 %v1515_v29, %v1509_v55  ;;  %v2388_v27 = vld [vmem:[%s3102_s7 + $0x18] sm:$0xff]   ;;  %v613_v55 = vpop.f32.mrb[5].mxu1 }
 0x16d   :  { %v1831_v35 = vadd.f32 %v1830_v8, %v1824_v44  ;;  %v1620_v52 = vadd.f32 %v1619_v3, %v1613_v56  ;;  %v1617_v48 = vmul.f32 %v2983_v23, %v1414_v59  ;;  %v1618_v10 = vmul.f32 %v2992_v58, %v1415_v50  ;;  %2283 = vmatmul.mubr.bf16.gmra.mrb[20].mxu0 %v2388_v27 }
 0x16e   :  { %v1517_v2 = vadd.f32 %v1516_v32, %v1510_v26  ;;  %v1722_v54 = vmul.f32 %v2897_v25, %v1414_v59  ;;  %v1723_v6 = vmul.f32 %v2986_v28, %v1415_v50  ;;  %v1728_v38 = vadd.f32 %v1727_v14, %v1721_v18  ;;  %v2382_v28 = vld [vmem:[#allocation2 + $0x28] sm:$0xff]   ;;  %v2389_v18 = vld [vmem:[%s3102_s7 + $0x20] sm:$0xff]   ;;  %v2253_v26 = vpop.f32.mrb[6].mxu1 }
 0x16f   :  { %v1832_v9 = vadd.f32 %v1831_v35, %v1825_v11  ;;  %v1621_v20 = vadd.f32 %v1620_v52, %v1614_v42  ;;  %v1827_v7 = vmul.f32 %v2951_v31, %v1414_v59  ;;  %v1828_v37 = vmul.f32 %v2989_v57, %v1415_v50  ;;  %2304 = vmatprep.subr.bf16.mxu1 %v2382_v28  ;;  %v2383_v59 = vld [vmem:[%s3100_s5 + $0x30] sm:$0xff]   ;;  %v2384_v31 = vld [vmem:[%s3100_s5 + $0x38] sm:$0xff]   ;;  %v615_v41 = vpop.f32.mrb[7].mxu1 }
 0x170   :  { %v1518_v49 = vadd.f32 %v1517_v2, %v1511_v45  ;;  %v1729_v15 = vadd.f32 %v1728_v38, %v1722_v54  ;;  %2305 = vmatpush3.bf16.msra.mxu1 %v2382_v28  ;;  %v2385_v50 = vld [vmem:[#allocation2 + $0x30] sm:$0xff]   ;;  %2258 = vmatprep.mubr.bf16.mxu1 %v2383_v59  ;;  %v2386_v57 = vld [vmem:[#allocation2 + $0x38] sm:$0xff]   ;;  %v2256_v46 = vpop.f32.mrb[8].mxu1 }
 0x171   :  { %v1622_v34 = vadd.f32 %v1621_v20, %v1615_v16  ;;  %v1833_v33 = vadd.f32 %v1832_v9, %v1826_v13  ;;  %2306 = vmatprep.subr.bf16.mxu1 %v2385_v50  ;;  %2259 = vmatmul.mubr.bf16.gmra.mrb[12].mxu1 %v2384_v31  ;;  %v625_v19 = vpop.f32.mrb[9].mxu1 }
 0x172   :  { %v1519_v12 = vadd.f32 %v1518_v49, %v1512_v0  ;;  %v1730_v23 = vadd.f32 %v1729_v15, %v1723_v6  ;;  %2286 = vmatprep.mubr.bf16.mxu0 %v2389_v18  ;;  %v2257_v62 = vpop.f32.mrb[10].mxu1 }
 0x173   :  { %v1623_v39 = vadd.f32 %v1622_v34, %v1616_v4  ;;  %v1834_v58 = vadd.f32 %v1833_v33, %v1827_v7  ;;  %v627_v24 = vpop.f32.mrb[11].mxu1 }
 0x174   :  { %v1520_v40 = vadd.f32 %v1519_v12, %v1513_v30  ;;  %2307 = vmatpush3.bf16.msra.mxu1 %v2385_v50 }
 0x175   :  { %v1624_v61 = vadd.f32 %v1623_v39, %v1617_v48  ;;  %v1835_v25 = vadd.f32 %v1834_v58, %v1828_v37  ;;  %2308 = vmatprep.subr.bf16.mxu1 %v2386_v57  ;;  %2287 = vmatmul.mubr.bf16.gmra.mrb[24].mxu0 %v2390_v47  ;;  %v2125_v58 = vld [vmem:[%s3105_s10] ss:$0 sm:$0xff]  ;;  %s2464_s10 = smov [#allocation5]  }
 0x176   :  { %1836 = vxpose.xlu0.b32.start [1/4] (short) %v1520_v40, 128  ;;  %2290 = vmatprep.mubr.bf16.mxu0 %v2391_v51  ;;  %s2065_s16 = sshll.u32 %s2464_s10, 4  ;;  %s2066_s16 = int_to_ptr.vmem [resolvable:$true] %s2065_s16 }
 0x177   :  { %v1625_v22 = vadd.f32 %v1624_v61, %v1618_v10  ;;  %s2433_s3 = scalar_lea.vmem %s2066_s16, 2048  ;;  %p2438_p9 = scmp.lt.s32.totalorder %s2066_s16, %s2066_s16 }
 0x178   :  { %2309 = vmatpush3.bf16.msra.mxu1 %v2386_v57  ;;  %p2434_p8 = scmp.ne.s32.totalorder %s2066_s16, %s2433_s3  ;;  %p2439_p10 = scmp.lt.s32.totalorder %s2433_s3, %s2433_s3 }
 0x17a   :  { %1837 = vxpose.xlu0.b32.cont [2/4] (short) %v1625_v22, 128  ;;  %p2440_p11 = por %p2439_p10, %p2438_p9 }
 0x17c   :  { %p2441_p12 = pnand %p2440_p11, %p2434_p8 }
 0x17d   :  { %2291 = vmatmul.mubr.bf16.gmra.mrb[28].mxu0 %v2392_v17 }
 0x17e   :  { %1838 = vxpose.xlu0.b32.cont [3/4] (short) %v1730_v23, 128 }
 0x182   :  { %1839 = vxpose.xlu0.b32.end [4/4] (short) %v1835_v25, 128 }
 0x1f6   :  { %v1852_v44 = vpop.trf.xlu0 }
 0x1fa   :  { %v1853_v11 = vpop.trf.xlu0 }
 0x1fb   :  { %v1868_v13 = vpack.c.bf16 %v1853_v11, %v1852_v44 }
 0x1fd   :  { %2310 = vmatprep.mubr.bf16.mxu1 %v1868_v13 }
 0x1fe   :  { %v1854_v29 = vpop.trf.xlu0 }
 0x202   :  { %v1855_v36 = vpop.trf.xlu0 }
 0x203   :  { %v1869_v63 = vpack.c.bf16 %v1855_v36, %v1854_v29 }
 0x205   :  { %2311 = vmatmul.mubr.bf16.vlgmr.msra.gmra.mrb[16].mxu1 %v1869_v63 }
 0x206   :  { %v1856_v5 = vpop.trf.xlu0 }
 0x20a   :  { %v1857_v60 = vpop.trf.xlu0 }
 0x20b   :  { %v1870_v56 = vpack.c.bf16 %v1857_v60, %v1856_v5 }
 0x20d   :  { %2314 = vmatprep.mubr.bf16.mxu1 %v1870_v56 }
 0x20e   :  { %v1858_v42 = vpop.trf.xlu0 }
 0x212   :  { %v1859_v16 = vpop.trf.xlu0 }
 0x213   :  { %v1871_v8 = vpack.c.bf16 %v1859_v16, %v1858_v42 }
 0x215   :  { %2315 = vmatmul.mubr.bf16.gmra.mrb[20].mxu1 %v1871_v8 }
 0x216   :  { %v1860_v1 = vpop.trf.xlu0 }
 0x21a   :  { %v1861_v4 = vpop.trf.xlu0 }
 0x21b   :  { %v1872_v3 = vpack.c.bf16 %v1861_v4, %v1860_v1 }
 0x21d   :  { %2318 = vmatprep.mubr.bf16.mxu1 %v1872_v3 }
 0x21e   :  { %v1862_v21 = vpop.trf.xlu0 }
 0x222   :  { %v1863_v45 = vpop.trf.xlu0 }
 0x223   :  { %v1873_v14 = vpack.c.bf16 %v1863_v45, %v1862_v21 }
 0x225   :  { %2319 = vmatmul.mubr.bf16.gmra.mrb[24].mxu1 %v1873_v14 }
 0x226   :  { %v1864_v0 = vpop.trf.xlu0 }
 0x22a   :  { %v1865_v30 = vpop.trf.xlu0 }
 0x22b   :  { %v1874_v32 = vpack.c.bf16 %v1865_v30, %v1864_v0 }
 0x22d   :  { %2322 = vmatprep.mubr.bf16.mxu1 %v1874_v32 }
 0x22e   :  { %v1866_v35 = vpop.trf.xlu0 }
 0x232   :  { %v1867_v52 = vpop.trf.xlu0 }
 0x233   :  { %v1875_v48 = vpack.c.bf16 %v1867_v52, %v1866_v35 }
 0x235   :  { %2323 = vmatmul.mubr.bf16.gmra.mrb[28].mxu1 %v1875_v48 }
 0x240   :  { %v2284_v38 = vpop.f32.mrb[20].mxu0 }
 0x241   :  { %v910_v9 = vpop.f32.mrb[21].mxu0 }
 0x242   :  { %v2285_v20 = vpop.f32.mrb[22].mxu0 }
 0x243   :  { %v912_v7 = vpop.f32.mrb[23].mxu0 }
 0x244   :  { %v2260_v10 = vpop.f32.mrb[12].mxu1 }
 0x245   :  { %v637_v2 = vpop.f32.mrb[13].mxu1 }
 0x246   :  { %v2261_v54 = vpop.f32.mrb[14].mxu1 }
 0x247   :  { %v639_v6 = vpop.f32.mrb[15].mxu1 }
 0x248   :  { %v2288_v37 = vpop.f32.mrb[24].mxu0 }
 0x249   :  { %v922_v49 = vpop.f32.mrb[25].mxu0 }
 0x24a   :  { %v2289_v15 = vpop.f32.mrb[26].mxu0 }
 0x24b   :  { %v924_v34 = vpop.f32.mrb[27].mxu0 }
 0x250   :  { %v2292_v33 = vpop.f32.mrb[28].mxu0 }
 0x251   :  { %v934_v12 = vpop.f32.mrb[29].mxu0 }
 0x252   :  { %v2293_v23 = vpop.f32.mrb[30].mxu0 }
 0x253   :  { %v936_v39 = vpop.f32.mrb[31].mxu0 }
 0x2d8   :  { %v2312_v40 = vpop.f32.mrb[16].mxu1 }
 0x2d9   :  { %v1990_v61 = vadd.f32 %v2312_v40, %v2125_v58  ;;  %v1981_v25 = vpop.f32.mrb[17].mxu1 }
 0x2da   :  { %v1982_v28 = vadd.f32 %v2125_v58, %v1981_v25  ;;  %v2313_v22 = vpop.f32.mrb[18].mxu1 }
 0x2db   :  { %2046 = vst [vmem:[#allocation5 + $0x10] sm:$0xff] %v1990_v61  ;;  %v1993_v59 = vadd.f32 %v2313_v22, %v2125_v58  ;;  %v1984_v31 = vpop.f32.mrb[19].mxu1 }
 0x2dc   :  { %2044 = vst [vmem:[#allocation5] sm:$0xff] %v1982_v28  ;;  %v1985_v50 = vadd.f32 %v2125_v58, %v1984_v31 }
 0x2dd   :  { %2047 = vst [vmem:[#allocation5 + $0x18] sm:$0xff] %v1993_v59 }
 0x2de   :  { %2045 = vst [vmem:[#allocation5 + $0x8] sm:$0xff] %v1985_v50 }
 0x2e8   :  { %v2316_v57 = vpop.f32.mrb[20].mxu1 }
 0x2e9   :  { %v2006_v53 = vadd.f32 %v2316_v57, %v2125_v58  ;;  %v1997_v27 = vpop.f32.mrb[21].mxu1 }
 0x2ea   :  { %v1998_v18 = vadd.f32 %v2125_v58, %v1997_v27  ;;  %v2317_v47 = vpop.f32.mrb[22].mxu1 }
 0x2eb   :  { %2050 = vst [vmem:[#allocation5 + $0x30] sm:$0xff] %v2006_v53  ;;  %v2009_v51 = vadd.f32 %v2317_v47, %v2125_v58  ;;  %v2000_v17 = vpop.f32.mrb[23].mxu1 }
 0x2ec   :  { %2048 = vst [vmem:[#allocation5 + $0x20] sm:$0xff] %v1998_v18  ;;  %v2001_v43 = vadd.f32 %v2125_v58, %v2000_v17 }
 0x2ed   :  { %2051 = vst [vmem:[#allocation5 + $0x38] sm:$0xff] %v2009_v51 }
 0x2ee   :  { %2049 = vst [vmem:[#allocation5 + $0x28] sm:$0xff] %v2001_v43 }
 0x2f8   :  { %v2320_v55 = vpop.f32.mrb[24].mxu1 }
 0x2f9   :  { %v2022_v26 = vadd.f32 %v2320_v55, %v2125_v58  ;;  %v2013_v41 = vpop.f32.mrb[25].mxu1 }
 0x2fa   :  { %v2014_v46 = vadd.f32 %v2125_v58, %v2013_v41  ;;  %v2321_v19 = vpop.f32.mrb[26].mxu1 }
 0x2fb   :  { %2054 = vst [vmem:[#allocation5 + $0x50] sm:$0xff] %v2022_v26  ;;  %v2025_v62 = vadd.f32 %v2321_v19, %v2125_v58  ;;  %v2016_v24 = vpop.f32.mrb[27].mxu1 }
 0x2fc   :  { %2052 = vst [vmem:[#allocation5 + $0x40] sm:$0xff] %v2014_v46  ;;  %v2017_v44 = vadd.f32 %v2125_v58, %v2016_v24 }
 0x2fd   :  { %2055 = vst [vmem:[#allocation5 + $0x58] sm:$0xff] %v2025_v62 }
 0x2fe   :  { %2053 = vst [vmem:[#allocation5 + $0x48] sm:$0xff] %v2017_v44 }
 0x308   :  { %v2324_v11 = vpop.f32.mrb[28].mxu1 }
 0x309   :  { %v2038_v13 = vadd.f32 %v2324_v11, %v2125_v58  ;;  %v2029_v29 = vpop.f32.mrb[29].mxu1 }
 0x30a   :  { %v2030_v36 = vadd.f32 %v2125_v58, %v2029_v29  ;;  %v2325_v63 = vpop.f32.mrb[30].mxu1 }
 0x30b   :  { %2058 = vst [vmem:[#allocation5 + $0x70] sm:$0xff] %v2038_v13  ;;  %v2041_v5 = vadd.f32 %v2325_v63, %v2125_v58  ;;  %v2032_v60 = vpop.f32.mrb[31].mxu1 }
 0x30c   :  { %2056 = vst [vmem:[#allocation5 + $0x60] sm:$0xff] %v2030_v36  ;;  %v2033_v56 = vadd.f32 %v2125_v58, %v2032_v60 }
 0x30d   :  { %2059 = vst [vmem:[#allocation5 + $0x78] sm:$0xff] %v2041_v5 }
 0x30e   :  { %2057 = vst [vmem:[#allocation5 + $0x68] sm:$0xff] %v2033_v56 }
 0x30f   :  { %2444 = shalt.err (!%p2441_p12)
}
 0x310   :  { %s2445_s8 = scalar_lea.hbm %s3106_s11, 2048 }
 0x311   :  { %p2446_p13 = scmp.ne.s32.totalorder %s3106_s11, %s2445_s8  ;;  %p2449_p0 = scmp.lt.u32.totalorder %s2445_s8, %s3106_s11 }
 0x313   :  { %p2451_p1 = pnand %p2449_p0, %p2446_p13 }
 0x315   :  { %2454 = shalt.err (!%p2451_p1)
}
 0x316   :  { %s2465_s21 = smov 128   ;;  %s2466_s22 = smov 8  }
 0x317   :  { %2071 = dma.vmem_to_hbm [thread:$0]  %s2066_s16, 2048, %s3106_s11, [#allocation4], %s2465_s21, %s2465_s21, %s2466_s22  }
 0x318   :  { %2457 = dma.done.wait [#allocation4], 2048  }
 0x319   :  { %2458 = vsyncadd [#allocation4], 4294965248 }
 0x31a   :  { %2075 = vsyncpa [#allocation3], 1 }
 0x31b   :  { %2076 = vsyncpa [#allocation4], 1 }

// kernel: tpu_custom_call.1
= control target key start
LH: loop header
LB: loop body
LE: loop exit
PB: predicated region body
PF: predicated region fallthrough
CT: control target
= control target key end

     0   :  { %16 = vsyncpa [#allocation3], 0  ;;  %s3095_s0 = inlined_call_operand.vmem [shape: bf16[128,128], index: 0, kind: input, shape index: {}]   ;;  %s3096_s1 = inlined_call_operand.vmem [shape: bf16[128,128], index: 1, kind: input, shape index: {}]   ;;  %s3097_s2 = inlined_call_operand.vmem [shape: bf16[128,128], index: 2, kind: input, shape index: {}]   ;;  %s3098_s3 = inlined_call_operand.vmem [shape: bf16[128,128], index: 3, kind: input, shape index: {}]   ;;  %s3099_s4 = inlined_call_operand.vmem [shape: f32[128,1], index: 4, kind: input, shape index: {}]   ;;  %s3100_s5 = inlined_call_operand.vmem [shape: bf16[128,128], index: 5, kind: input, shape index: {}]   ;;  %s3101_s6 = inlined_call_operand.vmem [shape: f32[128,1], index: 6, kind: input, shape index: {}]   ;;  %s3102_s7 = inlined_call_operand.vmem [shape: bf16[128,128], index: 7, kind: input, shape index: {}]   ;;  %s3103_s8 = inlined_call_operand.vmem [shape: f32[128,1], index: 8, kind: input, shape index: {}]   ;;  %s3104_s9 = inlined_call_operand.hbm [shape: bf16[128,128], index: 9, kind: input, shape index: {}]   ;;  %s3105_s10 = inlined_call_operand.vmem [shape: f32[1,128], index: 10, kind: input, shape index: {}]   ;;  %s3106_s11 = inlined_call_operand.hbm [shape: f32[128,128], index: 11, kind: output, shape index: {}]  }
   0x1   :  { %17 = vsyncpa [#allocation4], 0  ;;  %s2459_s17 = smov [#allocation2]   ;;  %s2411_s21 = scalar_lea.hbm %s3104_s9, 1024 }
   0x2   :  { %s41_s18 = sshll.u32 %s2459_s17, 4  ;;  %p2412_p0 = scmp.ne.s32.totalorder %s3104_s9, %s2411_s21  ;;  %s42_s18 = int_to_ptr.vmem [resolvable:$true] %s41_s18 }
   0x3   :  { %p2415_p1 = scmp.lt.u32.totalorder %s2411_s21, %s3104_s9 }
   0x5   :  { %p2417_p2 = pnand %p2415_p1, %p2412_p0 }
   0x7   :  { %2420 = shalt.err (!%p2417_p2)
}
   0x8   :  { %s2421_s26 = scalar_lea.vmem %s42_s18, 1024  ;;  %p2426_p4 = scmp.lt.s32.totalorder %s42_s18, %s42_s18 }
   0x9   :  { %p2422_p3 = scmp.ne.s32.totalorder %s42_s18, %s2421_s26  ;;  %p2427_p5 = scmp.lt.s32.totalorder %s2421_s26, %s2421_s26 }
   0xb   :  { %p2428_p6 = por %p2427_p5, %p2426_p4 }
   0xd   :  { %p2429_p7 = pnand %p2428_p6, %p2422_p3 }
   0xf   :  { %2432 = shalt.err (!%p2429_p7)
}
  0x10   :  { %s2460_s27 = smov 64   ;;  %s2461_s28 = smov 4  }
  0x11   :  { %47 = dma.hbm_to_vmem [thread:$0]  %s3104_s9, 1024, %s42_s18, [#allocation3], %s2460_s27, %s2460_s27, %s2461_s28  }
  0x12   :  { %2455 = dma.done.wait [#allocation3], 1024  }
  0x13   :  { %2456 = vsyncadd [#allocation3], 4294966272  ;;  %v2462_v0 = vmov 0   ;;  %v2337_v1 = vld [vmem:[%s3095_s0] sm:$0xff]   ;;  %v2339_v3 = vld [vmem:[%s3095_s0 + $0x8] sm:$0xff]   ;;  %v950_v53 = vlaneseq }
  0x14   :  { %2335 = vset.pattern.permute.xlu0 %v2462_v0  ;;  %2336 = vset.pattern.permute.xlu1 %v2462_v0  ;;  %v2338_v2 = vld [vmem:[%s3096_s1] sm:$0xff]   ;;  %v2340_v4 = vld [vmem:[%s3096_s1 + $0x8] sm:$0xff]   ;;  %v2341_v5 = vld [vmem:[%s3095_s0 + $0x10] sm:$0xff]   ;;  %v2463_v51 = vmov 1966171168  }
  0x15   :  { %2198 = vmatprep.subr.bf16.mxu0 %v2337_v1  ;;  %2230 = vmatprep.subr.bf16.mxu1 %v2338_v2  ;;  %v2342_v6 = vld [vmem:[%s3096_s1 + $0x10] sm:$0xff]   ;;  %v2343_v7 = vld [vmem:[%s3095_s0 + $0x18] sm:$0xff]   ;;  %v2345_v9 = vld [vmem:[%s3095_s0 + $0x20] sm:$0xff]   ;;  %v948_v52 = vunpack.c.l.s4 %v2463_v51  ;;  %v951_v57 = vshrl.u32 %v950_v53, 7 }
  0x16   :  { %2199 = vmatpush3.bf16.msra.mxu0 %v2337_v1  ;;  %2231 = vmatpush3.bf16.msra.mxu1 %v2338_v2  ;;  %v2344_v8 = vld [vmem:[%s3096_s1 + $0x18] sm:$0xff]   ;;  %v2346_v10 = vld [vmem:[%s3096_s1 + $0x20] sm:$0xff]   ;;  %v2347_v11 = vld [vmem:[%s3095_s0 + $0x28] sm:$0xff]  }
  0x17   :  { %2200 = vmatprep.subr.bf16.mxu0 %v2339_v3  ;;  %2232 = vmatprep.subr.bf16.mxu1 %v2340_v4  ;;  %v2348_v12 = vld [vmem:[%s3096_s1 + $0x28] sm:$0xff]   ;;  %v2353_v13 = vld [vmem:[%s3098_s3] sm:$0xff]   ;;  %v2349_v15 = vld [vmem:[%s3095_s0 + $0x30] sm:$0xff]   ;;  %v949_v56 = vunpack.c.0.s8 %v948_v52 }
  0x18   :  { %v2354_v14 = vld [vmem:[%s3100_s5] sm:$0xff]   ;;  %2214 = vmatprep.mubr.bf16.mxu0 %v2353_v13  ;;  %v2350_v16 = vld [vmem:[%s3096_s1 + $0x30] sm:$0xff]   ;;  %v2351_v17 = vld [vmem:[%s3095_s0 + $0x38] sm:$0xff]  }
  0x19   :  { %2246 = vmatprep.mubr.bf16.mxu1 %v2354_v14  ;;  %v2352_v18 = vld [vmem:[%s3096_s1 + $0x38] sm:$0xff]   ;;  %v2357_v19 = vld [vmem:[%s3097_s2] sm:$0xff]   ;;  %v2355_v20 = vld [vmem:[%s3098_s3 + $0x8] sm:$0xff]   ;;  %v2692_v2 = vsub.s32 %v949_v56, %v951_v57 }
  0x1a   :  { %2201 = vmatpush3.bf16.msra.mxu0 %v2339_v3  ;;  %2233 = vmatpush3.bf16.msra.mxu1 %v2340_v4  ;;  %v2356_v21 = vld [vmem:[%s3100_s5 + $0x8] sm:$0xff]   ;;  %v2359_v23 = vld [vmem:[%s3098_s3 + $0x10] sm:$0xff]   ;;  %v383_v25 = vld [vmem:[%s3101_s6] sm:$0xff] }
  0x1b   :  { %2202 = vmatprep.subr.bf16.mxu0 %v2341_v5  ;;  %2234 = vmatprep.subr.bf16.mxu1 %v2342_v6  ;;  %v2358_v22 = vld [vmem:[%s3097_s2 + $0x8] sm:$0xff]   ;;  %v2361_v24 = vld [vmem:[%s3097_s2 + $0x10] sm:$0xff]   ;;  %v2360_v27 = vld [vmem:[%s3098_s3 + $0x18] sm:$0xff]  }
  0x1c   :  { %v385_v26 = vld [vmem:[%s3101_s6 + $0x10] sm:$0xff]  ;;  %401 = vperm.xlu0 %2335, %v383_v25   ;;  %v384_v28 = vld [vmem:[%s3101_s6 + $0x8] sm:$0xff]  ;;  %v386_v29 = vld [vmem:[%s3101_s6 + $0x18] sm:$0xff] }
  0x1d   :  { %411 = vperm.xlu1 %2336, %v385_v26   ;;  %v2362_v30 = vld [vmem:[%s3097_s2 + $0x18] sm:$0xff]   ;;  %v2363_v31 = vld [vmem:[%s3098_s3 + $0x20] sm:$0xff]   ;;  %v87_v33 = vld [vmem:[%s3099_s4 + $0x8] sm:$0xff] }
  0x1e   :  { %2203 = vmatpush3.bf16.msra.mxu0 %v2341_v5  ;;  %2235 = vmatpush3.bf16.msra.mxu1 %v2342_v6  ;;  %v86_v32 = vld [vmem:[%s3099_s4] sm:$0xff]  ;;  %v2364_v35 = vld [vmem:[%s3098_s3 + $0x28] sm:$0xff]   ;;  %v88_v36 = vld [vmem:[%s3099_s4 + $0x10] sm:$0xff] }
  0x1f   :  { %2204 = vmatprep.subr.bf16.mxu0 %v2343_v7  ;;  %2236 = vmatprep.subr.bf16.mxu1 %v2344_v8  ;;  %v2365_v34 = vld [vmem:[%s3097_s2 + $0x20] sm:$0xff]   ;;  %v89_v37 = vld [vmem:[%s3099_s4 + $0x18] sm:$0xff]  ;;  %v2367_v38 = vld [vmem:[%s3098_s3 + $0x30] sm:$0xff]  }
  0x20   :  { %406 = vperm.xlu0 %2335, %v384_v28   ;;  %v2366_v39 = vld [vmem:[%s3097_s2 + $0x28] sm:$0xff]   ;;  %v680_v40 = vld [vmem:[%s3103_s8] sm:$0xff]  ;;  %v2369_v42 = vld [vmem:[%s3097_s2 + $0x30] sm:$0xff]  }
  0x21   :  { %416 = vperm.xlu1 %2336, %v386_v29   ;;  %v681_v41 = vld [vmem:[%s3103_s8 + $0x8] sm:$0xff]  ;;  %v2368_v43 = vld [vmem:[%s3098_s3 + $0x38] sm:$0xff]   ;;  %v682_v44 = vld [vmem:[%s3103_s8 + $0x10] sm:$0xff] }
  0x22   :  { %2205 = vmatpush3.bf16.msra.mxu0 %v2343_v7  ;;  %2237 = vmatpush3.bf16.msra.mxu1 %v2344_v8  ;;  %v683_v45 = vld [vmem:[%s3103_s8 + $0x18] sm:$0xff]  ;;  %v2371_v46 = vld [vmem:[%s3102_s7] sm:$0xff]   ;;  %v2372_v48 = vld [vmem:[%s3102_s7 + $0x8] sm:$0xff]  }
  0x23   :  { %2206 = vmatprep.subr.bf16.mxu0 %v2345_v9  ;;  %2238 = vmatprep.subr.bf16.mxu1 %v2346_v10  ;;  %v2370_v47 = vld [vmem:[%s3097_s2 + $0x38] sm:$0xff]   ;;  %v2373_v58 = vld [vmem:[#allocation2] sm:$0xff]   ;;  %v2374_v59 = vld [vmem:[#allocation2 + $0x8] sm:$0xff]  }
  0x24   :  { %104 = vperm.xlu0 %2335, %v86_v32   ;;  %v2375_v60 = vld [vmem:[%s3100_s5 + $0x10] sm:$0xff]   ;;  %v2376_v61 = vld [vmem:[%s3100_s5 + $0x18] sm:$0xff]   ;;  %v2379_v62 = vld [vmem:[%s3100_s5 + $0x20] sm:$0xff]  }
  0x25   :  { %109 = vperm.xlu1 %2336, %v87_v33   ;;  %v2377_v3 = vld [vmem:[#allocation2 + $0x10] sm:$0xff]  }
  0x26   :  { %2207 = vmatpush3.bf16.msra.mxu0 %v2345_v9  ;;  %2239 = vmatpush3.bf16.msra.mxu1 %v2346_v10  ;;  %v2696_v9 = vsub.s32 0, %v951_v57 }
  0x27   :  { %2208 = vmatprep.subr.bf16.mxu0 %v2347_v11  ;;  %2240 = vmatprep.subr.bf16.mxu1 %v2348_v12 }
  0x28   :  { %114 = vperm.xlu0 %2335, %v88_v36  }
  0x29   :  { %119 = vperm.xlu1 %2336, %v89_v37   ;;  %v2381_v37 = vld [vmem:[#allocation2 + $0x20] sm:$0xff]  }
  0x2a   :  { %2209 = vmatpush3.bf16.msra.mxu0 %v2347_v11  ;;  %2241 = vmatpush3.bf16.msra.mxu1 %v2348_v12 }
  0x2b   :  { %2210 = vmatprep.subr.bf16.mxu0 %v2349_v15  ;;  %2242 = vmatprep.subr.bf16.mxu1 %v2350_v16 }
  0x2c   :  { %698 = vperm.xlu0 %2335, %v680_v40  }
  0x2d   :  { %703 = vperm.xlu1 %2336, %v681_v41  }
  0x2e   :  { %2211 = vmatpush3.bf16.msra.mxu0 %v2349_v15  ;;  %2243 = vmatpush3.bf16.msra.mxu1 %v2350_v16 }
  0x2f   :  { %2212 = vmatprep.subr.bf16.mxu0 %v2351_v17  ;;  %2244 = vmatprep.subr.bf16.mxu1 %v2352_v18 }
  0x30   :  { %708 = vperm.xlu0 %2335, %v682_v44  }
  0x31   :  { %713 = vperm.xlu1 %2336, %v683_v45  }
  0x32   :  { %2213 = vmatpush3.bf16.msra.mxu0 %v2351_v17  ;;  %2245 = vmatpush3.bf16.msra.mxu1 %v2352_v18  ;;  %v2378_v18 = vld [vmem:[#allocation2 + $0x18] sm:$0xff]  }
  0x33   :  { %2262 = vmatprep.subr.bf16.mxu0 %v2357_v19  ;;  %2294 = vmatprep.subr.bf16.mxu1 %v2373_v58 }
  0x35   :  { %2215 = vmatmul.mubr.bf16.vlgmr.msra.gmra.mrb[0].mxu0 %v2355_v20  ;;  %2247 = vmatmul.mubr.bf16.vlgmr.msra.gmra.mrb[0].mxu1 %v2356_v21 }
  0x36   :  { %2263 = vmatpush3.bf16.msra.mxu0 %v2357_v19  ;;  %2218 = vmatprep.mubr.bf16.mxu0 %v2359_v23  ;;  %v2380_v23 = vld [vmem:[%s3100_s5 + $0x28] sm:$0xff]  }
  0x37   :  { %2264 = vmatprep.subr.bf16.mxu0 %v2358_v22  ;;  %2250 = vmatprep.mubr.bf16.mxu1 %v2375_v60 }
  0x38   :  { %2295 = vmatpush3.bf16.msra.mxu1 %v2373_v58 }
  0x39   :  { %2296 = vmatprep.subr.bf16.mxu1 %v2374_v59 }
  0x3a   :  { %2265 = vmatpush3.bf16.msra.mxu0 %v2358_v22 }
  0x3b   :  { %2266 = vmatprep.subr.bf16.mxu0 %v2361_v24 }
  0x3c   :  { %2297 = vmatpush3.bf16.msra.mxu1 %v2374_v59 }
  0x3d   :  { %2219 = vmatmul.mubr.bf16.gmra.mrb[4].mxu0 %v2360_v27  ;;  %2251 = vmatmul.mubr.bf16.gmra.mrb[4].mxu1 %v2376_v61 }
  0x3e   :  { %2267 = vmatpush3.bf16.msra.mxu0 %v2361_v24  ;;  %2222 = vmatprep.mubr.bf16.mxu0 %v2363_v31 }
  0x3f   :  { %2268 = vmatprep.subr.bf16.mxu0 %v2362_v30  ;;  %2254 = vmatprep.mubr.bf16.mxu1 %v2379_v62 }
  0x40   :  { %2298 = vmatprep.subr.bf16.mxu1 %v2377_v3 }
  0x41   :  { %2299 = vmatpush3.bf16.msra.mxu1 %v2377_v3 }
  0x42   :  { %2269 = vmatpush3.bf16.msra.mxu0 %v2362_v30  ;;  %2300 = vmatprep.subr.bf16.mxu1 %v2378_v18 }
  0x43   :  { %2270 = vmatprep.subr.bf16.mxu0 %v2365_v34 }
  0x45   :  { %2223 = vmatmul.mubr.bf16.gmra.mrb[8].mxu0 %v2364_v35  ;;  %2255 = vmatmul.mubr.bf16.gmra.mrb[8].mxu1 %v2380_v23 }
  0x46   :  { %2271 = vmatpush3.bf16.msra.mxu0 %v2365_v34  ;;  %2226 = vmatprep.mubr.bf16.mxu0 %v2367_v38 }
  0x47   :  { %2272 = vmatprep.subr.bf16.mxu0 %v2366_v39  ;;  %2301 = vmatpush3.bf16.msra.mxu1 %v2378_v18 }
  0x48   :  { %2302 = vmatprep.subr.bf16.mxu1 %v2381_v37 }
  0x4a   :  { %2273 = vmatpush3.bf16.msra.mxu0 %v2366_v39 }
  0x4b   :  { %2274 = vmatprep.subr.bf16.mxu0 %v2369_v42  ;;  %2303 = vmatpush3.bf16.msra.mxu1 %v2381_v37 }
  0x4d   :  { %2227 = vmatmul.mubr.bf16.gmra.mrb[12].mxu0 %v2368_v43 }
  0x4e   :  { %2275 = vmatpush3.bf16.msra.mxu0 %v2369_v42  ;;  %2278 = vmatprep.mubr.bf16.mxu0 %v2371_v46 }
  0x4f   :  { %2276 = vmatprep.subr.bf16.mxu0 %v2370_v47 }
  0x52   :  { %2277 = vmatpush3.bf16.msra.mxu0 %v2370_v47 }
  0x55   :  { %2279 = vmatmul.mubr.bf16.vlgmr.msra.gmra.mrb[16].mxu0 %v2372_v48 }
  0x9b   :  { %v402_v49 = vpop.permute.xlu0 %401 }
  0x9c   :  { %v412_v54 = vpop.permute.xlu1 %411 }
  0x9f   :  { %v407_v50 = vpop.permute.xlu0 %406 }
  0xa0   :  { %v417_v63 = vpop.permute.xlu1 %416 }
  0xa3   :  { %v105_v55 = vpop.permute.xlu0 %104 }
  0xa4   :  { %v2748_v61 = vpop.permute.xlu1 %109 }
  0xa7   :  { %v115_v0 = vpop.permute.xlu0 %114 }
 0x108   :  { %v2216_v1 = vpop.f32.mrb[0].mxu0  ;;  %v2248_v4 = vpop.f32.mrb[0].mxu1 }
 0x109   :  { %v300_v5 = vpop.f32.mrb[1].mxu0  ;;  %v606_v6 = vadd.f32 %v2248_v4, %v412_v54  ;;  %v597_v7 = vpop.f32.mrb[1].mxu1  ;;  %v2700_v13 = vadd.f32 %v2216_v1, %v115_v0 }
 0x10a   :  { %v2694_v8 = vpop.f32.mrb[2].mxu0  ;;  %v598_v10 = vadd.f32 %v597_v7, %v402_v49  ;;  %v2249_v11 = vpop.f32.mrb[2].mxu1  ;;  %v2705_v19 = vadd.f32 %v300_v5, %v105_v55 }
 0x10b   :  { %v2698_v12 = vpop.f32.mrb[3].mxu0  ;;  %v1158_v14 = vcombine.high %v606_v6, %v606_v6  ;;  %v1165_v15 = vrot.slane %v606_v6, %v2692_v2  ;;  %v2703_v16 = vadd.f32 %v2249_v11, %v417_v63  ;;  %v600_v17 = vpop.f32.mrb[3].mxu1 }
 0x10c   :  { %v946_v20 = vcombine.high %v598_v10, %v598_v10  ;;  %v953_v21 = vrot.slane %v598_v10, %v2692_v2  ;;  %v2708_v22 = vadd.f32 %v600_v17, %v407_v50 }
 0x10d   :  { %v1172_v24 = vrot.slane %v1158_v14, %v2692_v2  ;;  %v1173_v25 = vcombine.high %v1165_v15, %v1165_v15  ;;  %v1181_v26 = vrot.slane %v1165_v15, %v2692_v2  ;;  %v1264_v27 = vcombine.high %v2703_v16, %v2703_v16 }
 0x10e   :  { %v960_v28 = vrot.slane %v946_v20, %v2692_v2  ;;  %v961_v29 = vcombine.high %v953_v21, %v953_v21  ;;  %v969_v30 = vrot.slane %v953_v21, %v2692_v2  ;;  %v2721_v31 = vrot.slane %v2703_v16, %v2692_v2 }
 0x10f   :  { %v1174_v32 = vcombine.high %v1172_v24, %v1172_v24  ;;  %v1188_v33 = vrot.slane %v1172_v24, %v2692_v2  ;;  %v1195_v34 = vrot.slane %v1173_v25, %v2692_v2  ;;  %v1203_v35 = vcombine.high %v1181_v26, %v1181_v26 }
 0x110   :  { %v2220_v36 = vpop.f32.mrb[4].mxu0  ;;  %v1210_v38 = vrot.slane %v1181_v26, %v2696_v9  ;;  %v962_v39 = vcombine.high %v960_v28, %v960_v28  ;;  %v976_v40 = vrot.slane %v960_v28, %v2692_v2  ;;  %v983_v41 = vrot.slane %v961_v29, %v2692_v2 }
 0x111   :  { %v316_v42 = vpop.f32.mrb[5].mxu0  ;;  %v1202_v43 = vrot.slane %v1174_v32, %v2692_v2  ;;  %v1204_v44 = vcombine.high %v1188_v33, %v1188_v33  ;;  %v1205_v45 = vcombine.high %v1195_v34, %v1195_v34  ;;  %v1214_v46 = vrot.slane %v1195_v34, %v2696_v9 }
 0x112   :  { %v2221_v47 = vpop.f32.mrb[6].mxu0  ;;  %v1218_v48 = vrot.slane %v1203_v35, %v2696_v9  ;;  %v1226_v49 = vrot.slane %v1188_v33, %v2696_v9  ;;  %v2733_v50 = vmul.f32 %v1210_v38, %v2700_v13  ;;  %v990_v51 = vrot.slane %v962_v39, %v2692_v2  ;;  %v120_v35 = vpop.permute.xlu1 %119 }
 0x113   :  { %v318_v52 = vpop.f32.mrb[7].mxu0  ;;  %v1206_v53 = vcombine.high %v1202_v43, %v1202_v43  ;;  %v1222_v54 = vrot.slane %v1205_v45, %v2696_v9  ;;  %v1230_v55 = vrot.slane %v1202_v43, %v2696_v9  ;;  %v1234_v56 = vrot.slane %v1204_v44, %v2696_v9 }
 0x114   :  { %v2740_v57 = vmul.f32 %v1214_v46, %v2700_v13  ;;  %v2743_v58 = vmul.f32 %v1218_v48, %v2700_v13  ;;  %v2746_v59 = vmul.f32 %v1226_v49, %v2700_v13  ;;  %v991_v60 = vcombine.high %v969_v30, %v969_v30 }
 0x115   :  { %v1238_v62 = vrot.slane %v1206_v53, %v2696_v9  ;;  %v2752_v63 = vmul.f32 %v1222_v54, %v2700_v13  ;;  %v2755_v0 = vmul.f32 %v1230_v55, %v2700_v13  ;;  %v2758_v1 = vmul.f32 %v1234_v56, %v2700_v13 }
 0x116   :  { %v992_v3 = vcombine.high %v976_v40, %v976_v40  ;;  %v993_v4 = vcombine.high %v983_v41, %v983_v41  ;;  %v994_v5 = vcombine.high %v990_v51, %v990_v51  ;;  %v998_v6 = vrot.slane %v969_v30, %v2696_v9 }
 0x117   :  { %v2762_v7 = vmul.f32 %v1238_v62, %v2700_v13  ;;  %v1002_v10 = vrot.slane %v983_v41, %v2696_v9  ;;  %v1006_v11 = vrot.slane %v991_v60, %v2696_v9  ;;  %v1014_v14 = vrot.slane %v976_v40, %v2696_v9 }
 0x118   :  { %v2224_v15 = vpop.f32.mrb[8].mxu0  ;;  %v1010_v17 = vrot.slane %v993_v4, %v2696_v9  ;;  %v1018_v18 = vrot.slane %v990_v51, %v2696_v9  ;;  %v1022_v20 = vrot.slane %v992_v3, %v2696_v9  ;;  %v1026_v21 = vrot.slane %v994_v5, %v2696_v9 }
 0x119   :  { %v328_v23 = vpop.f32.mrb[9].mxu0  ;;  %v2772_v24 = vmul.f32 %v998_v6, %v2705_v19  ;;  %v2775_v13 = vmul.f32 %v1002_v10, %v2705_v19  ;;  %v2778_v25 = vmul.f32 %v1006_v11, %v2705_v19  ;;  %v2781_v26 = vmul.f32 %v1014_v14, %v2705_v19 }
 0x11a   :  { %v2225_v28 = vpop.f32.mrb[10].mxu0  ;;  %v2784_v29 = vmul.f32 %v1010_v17, %v2705_v19  ;;  %v2787_v30 = vmul.f32 %v1018_v18, %v2705_v19  ;;  %v2790_v32 = vmul.f32 %v1022_v20, %v2705_v19  ;;  %v2793_v33 = vmul.f32 %v1026_v21, %v2705_v19 }
 0x11b   :  { %v330_v34 = vpop.f32.mrb[11].mxu0  ;;  %v1278_v36 = vrot.slane %v1264_v27, %v2692_v2  ;;  %v1279_v37 = vcombine.high %v2721_v31, %v2721_v31  ;;  %v1287_v38 = vrot.slane %v2721_v31, %v2692_v2  ;;  %v1052_v39 = vcombine.high %v2708_v22, %v2708_v22 }
 0x11c   :  { %v312_v40 = vadd.f32 %v2694_v8, %v120_v35  ;;  %v1059_v19 = vrot.slane %v2708_v22, %v2692_v2 }
 0x11d   :  { %v1280_v41 = vcombine.high %v1278_v36, %v1278_v36  ;;  %v1294_v42 = vrot.slane %v1278_v36, %v2692_v2  ;;  %v1301_v16 = vrot.slane %v1279_v37, %v2692_v2  ;;  %v1309_v27 = vcombine.high %v1287_v38, %v1287_v38 }
 0x11e   :  { %v1316_v43 = vrot.slane %v1287_v38, %v2696_v9  ;;  %v1066_v44 = vrot.slane %v1052_v39, %v2692_v2  ;;  %v1067_v45 = vcombine.high %v1059_v19, %v1059_v19  ;;  %v1075_v31 = vrot.slane %v1059_v19, %v2692_v2 }
 0x11f   :  { %v1308_v46 = vrot.slane %v1280_v41, %v2692_v2  ;;  %v1310_v47 = vcombine.high %v1294_v42, %v1294_v42  ;;  %v1311_v8 = vcombine.high %v1301_v16, %v1301_v16  ;;  %v1320_v48 = vrot.slane %v1301_v16, %v2696_v9 }
 0x120   :  { %v2228_v22 = vpop.f32.mrb[12].mxu0  ;;  %v1324_v49 = vrot.slane %v1309_v27, %v2696_v9  ;;  %v1332_v51 = vrot.slane %v1294_v42, %v2696_v9  ;;  %v1353_v52 = vmul.f32 %v1316_v43, %v312_v40  ;;  %v1068_v53 = vcombine.high %v1066_v44, %v1066_v44 }
 0x121   :  { %v340_v54 = vpop.f32.mrb[13].mxu0  ;;  %v1312_v55 = vcombine.high %v1308_v46, %v1308_v46  ;;  %v1328_v56 = vrot.slane %v1311_v8, %v2696_v9  ;;  %v1336_v60 = vrot.slane %v1308_v46, %v2696_v9  ;;  %v1340_v62 = vrot.slane %v1310_v47, %v2696_v9 }
 0x122   :  { %v2229_v3 = vpop.f32.mrb[14].mxu0  ;;  %v1354_v4 = vmul.f32 %v1320_v48, %v312_v40  ;;  %v1355_v5 = vmul.f32 %v1324_v49, %v312_v40  ;;  %v1357_v6 = vmul.f32 %v1332_v51, %v312_v40  ;;  %v1082_v10 = vrot.slane %v1066_v44, %v2692_v2  ;;  %v699_v44 = vpop.permute.xlu0 %698 }
 0x123   :  { %v342_v11 = vpop.f32.mrb[15].mxu0  ;;  %v1344_v14 = vrot.slane %v1312_v55, %v2696_v9  ;;  %v1356_v15 = vmul.f32 %v1328_v56, %v312_v40  ;;  %v1358_v17 = vmul.f32 %v1336_v60, %v312_v40  ;;  %v1359_v18 = vmul.f32 %v1340_v62, %v312_v40 }
 0x124   :  { %v1089_v20 = vrot.slane %v1067_v45, %v2692_v2  ;;  %v1096_v21 = vrot.slane %v1068_v53, %v2692_v2  ;;  %v1097_v23 = vcombine.high %v1075_v31, %v1075_v31  ;;  %v1098_v28 = vcombine.high %v1082_v10, %v1082_v10 }
 0x125   :  { %v1360_v34 = vmul.f32 %v1344_v14, %v312_v40  ;;  %v1104_v35 = vrot.slane %v1075_v31, %v2696_v9  ;;  %v1120_v36 = vrot.slane %v1082_v10, %v2696_v9  ;;  %v304_v37 = vadd.f32 %v2698_v12, %v2748_v61 }
 0x126   :  { %v1099_v38 = vcombine.high %v1089_v20, %v1089_v20  ;;  %v1100_v39 = vcombine.high %v1096_v21, %v1096_v21  ;;  %v1108_v19 = vrot.slane %v1089_v20, %v2696_v9  ;;  %v1112_v41 = vrot.slane %v1097_v23, %v2696_v9 }
 0x127   :  { %v1124_v42 = vrot.slane %v1096_v21, %v2696_v9  ;;  %v1128_v16 = vrot.slane %v1098_v28, %v2696_v9  ;;  %v1141_v27 = vmul.f32 %v1104_v35, %v304_v37  ;;  %v1145_v43 = vmul.f32 %v1120_v36, %v304_v37  ;;  %v2850_v21 = vpop.permute.xlu1 %703 }
 0x128   :  { %v2280_v40 = vpop.f32.mrb[16].mxu0  ;;  %v1116_v45 = vrot.slane %v1099_v38, %v2696_v9  ;;  %v1132_v31 = vrot.slane %v1100_v39, %v2696_v9  ;;  %v1142_v46 = vmul.f32 %v1108_v19, %v304_v37  ;;  %v1143_v12 = vmul.f32 %v1112_v41, %v304_v37 }
 0x129   :  { %v894_v61 = vpop.f32.mrb[17].mxu0  ;;  %v1146_v47 = vmul.f32 %v1124_v42, %v304_v37  ;;  %v1147_v8 = vmul.f32 %v1128_v16, %v304_v37  ;;  %v1149_v48 = vadd.f32 %v1141_v27, %v2772_v24  ;;  %v1153_v22 = vadd.f32 %v1145_v43, %v2781_v26 }
 0x12a   :  { %v2281_v49 = vpop.f32.mrb[18].mxu0  ;;  %v1144_v51 = vmul.f32 %v1116_v45, %v304_v37  ;;  %v1148_v53 = vmul.f32 %v1132_v31, %v304_v37  ;;  %v1150_v54 = vadd.f32 %v1142_v46, %v2775_v13  ;;  %v1151_v55 = vadd.f32 %v1143_v12, %v2778_v25 }
 0x12b   :  { %v2838_v56 = vpop.f32.mrb[19].mxu0  ;;  %v1154_v60 = vadd.f32 %v1146_v47, %v2787_v30  ;;  %v1155_v62 = vadd.f32 %v1147_v8, %v2790_v32  ;;  %v1255_v3 = vadd.f32 %v2733_v50, %v1149_v48  ;;  %v1259_v10 = vadd.f32 %v2746_v59, %v1153_v22  ;;  %v709_v32 = vpop.permute.xlu0 %708 }
 0x12c   :  { %v1152_v24 = vadd.f32 %v1144_v51, %v2784_v29  ;;  %v1156_v26 = vadd.f32 %v1148_v53, %v2793_v33  ;;  %v1256_v11 = vadd.f32 %v2740_v57, %v1150_v54  ;;  %v1257_v13 = vadd.f32 %v2743_v58, %v1151_v55 }
 0x12d   :  { %v1260_v25 = vadd.f32 %v2755_v0, %v1154_v60  ;;  %v1261_v14 = vadd.f32 %v2758_v1, %v1155_v62  ;;  %v1361_v20 = vadd.f32 %v1353_v52, %v1255_v3  ;;  %v1365_v30 = vadd.f32 %v1357_v6, %v1259_v10 }
 0x12e   :  { %v1258_v50 = vadd.f32 %v2752_v63, %v1152_v24  ;;  %v1262_v59 = vadd.f32 %v2762_v7, %v1156_v26  ;;  %v1362_v29 = vadd.f32 %v1354_v4, %v1256_v11  ;;  %v1363_v23 = vadd.f32 %v1355_v5, %v1257_v13 }
 0x12f   :  { %v1366_v33 = vadd.f32 %v1358_v17, %v1260_v25  ;;  %v1367_v28 = vadd.f32 %v1359_v18, %v1261_v14  ;;  %v1369_v57 = vmax.f32 %v1361_v20, %v1365_v30  ;;  %v903_v35 = vadd.f32 %v2280_v40, %v709_v32 }
 0x130   :  { %v1364_v58 = vadd.f32 %v1356_v15, %v1258_v50  ;;  %v1368_v36 = vadd.f32 %v1360_v34, %v1262_v59  ;;  %v2854_v0 = vadd.f32 %v894_v61, %v699_v44  ;;  %v714_v15 = vpop.permute.xlu1 %713 }
 0x131   :  { %v1370_v1 = vmax.f32 %v1362_v29, %v1366_v33  ;;  %v1371_v52 = vmax.f32 %v1363_v23, %v1367_v28  ;;  %v1627_v6 = vcombine.high %v903_v35, %v903_v35  ;;  %v1634_v37 = vrot.slane %v903_v35, %v2692_v2 }
 0x132   :  { %v1372_v38 = vmax.f32 %v1364_v58, %v1368_v36  ;;  %v1417_v63 = vcombine.high %v2854_v0, %v2854_v0  ;;  %v906_v42 = vadd.f32 %v2281_v49, %v714_v15 }
 0x133   :  { %v1373_v7 = vmax.f32 %v1369_v57, %v1370_v1  ;;  %v1641_v4 = vrot.slane %v1627_v6, %v2692_v2  ;;  %v1642_v5 = vcombine.high %v1634_v37, %v1634_v37  ;;  %v2861_v17 = vrot.slane %v1634_v37, %v2692_v2 }
 0x134   :  { %v1374_v18 = vmax.f32 %v1371_v52, %v1372_v38  ;;  %v1431_v34 = vrot.slane %v1417_v63, %v2692_v2  ;;  %v1732_v26 = vcombine.high %v906_v42, %v906_v42 }
 0x135   :  { %v1643_v39 = vcombine.high %v1641_v4, %v1641_v4  ;;  %v2865_v19 = vrot.slane %v1641_v4, %v2692_v2  ;;  %v2868_v41 = vrot.slane %v1642_v5, %v2692_v2  ;;  %v1672_v27 = vcombine.high %v2861_v17, %v2861_v17 }
 0x136   :  { %v1375_v16 = vmax.f32 %v1373_v7, %v1374_v18  ;;  %v1679_v43 = vrot.slane %v2861_v17, %v2696_v9  ;;  %v2875_v40 = vrot.slane %v1431_v34, %v2692_v2  ;;  %v1433_v55 = vcombine.high %v1431_v34, %v1431_v34 }
 0x137   :  { %v2878_v44 = vrot.slane %v1643_v39, %v2692_v2  ;;  %v1673_v45 = vcombine.high %v2865_v19, %v2865_v19  ;;  %v1674_v31 = vcombine.high %v2868_v41, %v2868_v41  ;;  %v1683_v46 = vrot.slane %v2868_v41, %v2696_v9 }
 0x138   :  { %v1382_v12 = vsub.f32 %v1367_v28, %v1375_v16  ;;  %v1383_v61 = vsub.f32 %v1368_v36, %v1375_v16  ;;  %v1376_v47 = vsub.f32 %v1361_v20, %v1375_v16  ;;  %v1377_v8 = vsub.f32 %v1362_v29, %v1375_v16 }
 0x139   :  { %v1378_v48 = vsub.f32 %v1363_v23, %v1375_v16  ;;  %v1379_v22 = vsub.f32 %v1364_v58, %v1375_v16  ;;  %v1380_v49 = vsub.f32 %v1365_v30, %v1375_v16  ;;  %v1381_v51 = vsub.f32 %v1366_v33, %v1375_v16 }
 0x13a   :  { %v1396_v53 = vmul.f32 1.442695, %v1382_v12  ;;  %v1384_v54 = vmul.f32 1.442695, %v1376_v47  ;;  %v1386_v60 = vmul.f32 1.442695, %v1377_v8  ;;  %v2887_v62 = vrot.slane %v1672_v27, %v2696_v9 }
 0x13b   :  { %v1388_v3 = vmul.f32 1.442695, %v1378_v48  ;;  %v1390_v10 = vmul.f32 1.442695, %v1379_v22  ;;  %v2890_v24 = vrot.slane %v1674_v31, %v2696_v9  ;;  %v1695_v11 = vrot.slane %v2865_v19, %v2696_v9 }
 0x13c   :  { %2393 = vpow2.f32 %v1396_v53  ;;  %v1699_v13 = vrot.slane %v2878_v44, %v2696_v9  ;;  %v2897_v25 = vrot.slane %v1673_v45, %v2696_v9  ;;  %v1392_v14 = vmul.f32 1.442695, %v1380_v49 }
 0x13d   :  { %2395 = vpow2.f32 %v1384_v54  ;;  %v2900_v20 = vrot.slane %v1433_v55, %v2692_v2  ;;  %v1394_v30 = vmul.f32 1.442695, %v1381_v51  ;;  %v1398_v32 = vmul.f32 1.442695, %v1383_v61 }
 0x13e   :  { %2397 = vpow2.f32 %v1386_v60  ;;  %v1463_v50 = vcombine.high %v2875_v40, %v2875_v40  ;;  %v1739_v29 = vrot.slane %v906_v42, %v2692_v2  ;;  %v1746_v23 = vrot.slane %v1732_v26, %v2692_v2 }
 0x13f   :  { %2399 = vpow2.f32 %v1388_v3  ;;  %v1675_v33 = vcombine.high %v2878_v44, %v2878_v44  ;;  %v898_v28 = vadd.f32 %v2838_v56, %v2850_v21  ;;  %v1465_v57 = vcombine.high %v2900_v20, %v2900_v20 }
 0x140   :  { %2401 = vpow2.f32 %v1390_v10  ;;  %v1747_v35 = vcombine.high %v1739_v29, %v1739_v29  ;;  %v1748_v58 = vcombine.high %v1746_v23, %v1746_v23  ;;  %v2915_v36 = vrot.slane %v1739_v29, %v2692_v2 }
 0x141   :  { %2403 = vpow2.f32 %v1392_v14  ;;  %v2918_v1 = vrot.slane %v1746_v23, %v2692_v2  ;;  %v1522_v52 = vcombine.high %v898_v28, %v898_v28  ;;  %v1529_v6 = vrot.slane %v898_v28, %v2692_v2 }
 0x142   :  { %2405 = vpow2.f32 %v1394_v30  ;;  %v2922_v37 = vrot.slane %v1463_v50, %v2696_v9  ;;  %v2925_v56 = vrot.slane %v1747_v35, %v2692_v2  ;;  %v2928_v21 = vrot.slane %v1748_v58, %v2692_v2 }
 0x143   :  { %v1777_v38 = vcombine.high %v2915_v36, %v2915_v36  ;;  %v1784_v63 = vrot.slane %v2915_v36, %v2696_v9  ;;  %v1778_v7 = vcombine.high %v2918_v1, %v2918_v1  ;;  %v1800_v4 = vrot.slane %v2918_v1, %v2696_v9 }
 0x144   :  { %v1536_v5 = vrot.slane %v1522_v52, %v2692_v2  ;;  %v1537_v15 = vcombine.high %v1529_v6, %v1529_v6  ;;  %v1779_v34 = vcombine.high %v2925_v56, %v2925_v56  ;;  %v1780_v39 = vcombine.high %v2928_v21, %v2928_v21 }
 0x145   :  { %v1788_v42 = vrot.slane %v2925_v56, %v2696_v9  ;;  %v2946_v16 = vrot.slane %v1777_v38, %v2696_v9  ;;  %v1804_v45 = vrot.slane %v2928_v21, %v2696_v9  ;;  %v2951_v31 = vrot.slane %v1778_v7, %v2696_v9 }
 0x146   :  { %v2394_v18 = vpop.eup %2393  ;;  %v1538_v12 = vcombine.high %v1536_v5, %v1536_v5  ;;  %v2954_v61 = vrot.slane %v1529_v6, %v2692_v2  ;;  %v2957_v8 = vrot.slane %v1779_v34, %v2696_v9  ;;  %v2960_v48 = vrot.slane %v1536_v5, %v2692_v2 }
 0x147   :  { %v2396_v27 = vpop.eup %2395  ;;  %v2963_v22 = vrot.slane %v1537_v15, %v2692_v2  ;;  %v2966_v49 = vrot.slane %v1465_v57, %v2696_v9  ;;  %2407 = vpow2.f32 %v1398_v32  ;;  %v2986_v28 = vrot.slane %v1675_v33, %v2696_v9 }
 0x148   :  { %v2398_v47 = vpop.eup %2397  ;;  %v2969_v54 = vrot.slane %v1538_v12, %v2692_v2  ;;  %v1568_v60 = vcombine.high %v2960_v48, %v2960_v48  ;;  %v1590_v10 = vrot.slane %v2960_v48, %v2696_v9  ;;  %v2989_v57 = vrot.slane %v1780_v39, %v2696_v9 }
 0x149   :  { %v2400_v51 = vpop.eup %2399  ;;  %v1400_v53 = vadd.f32 %v2398_v47, %v2396_v27  ;;  %v1569_v3 = vcombine.high %v2963_v22, %v2963_v22  ;;  %v1424_v38 = vrot.slane %v2854_v0, %v2692_v2  ;;  %v3108_v21 = vrot.slane %v2900_v20, %v2696_v9 }
 0x14a   :  { %v2402_v55 = vpop.eup %2401  ;;  %v1570_v30 = vcombine.high %v2969_v54, %v2969_v54  ;;  %v2983_v23 = vrot.slane %v1568_v60, %v2696_v9  ;;  %v1567_v60 = vcombine.high %v2954_v61, %v2954_v61  ;;  %v3107_v1 = vrot.slane %v2969_v54, %v2696_v9 }
 0x14b   :  { %v2404_v26 = vpop.eup %2403  ;;  %v1401_v14 = vadd.f32 %v2400_v51, %v1400_v53  ;;  %v1586_v32 = vrot.slane %v1569_v3, %v2696_v9  ;;  %v1432_v34 = vcombine.high %v1424_v38, %v1424_v38  ;;  %v1440_v33 = vrot.slane %v1424_v38, %v2692_v2 }
 0x14c   :  { %v2406_v29 = vpop.eup %2405  ;;  %v2992_v58 = vrot.slane %v1570_v30, %v2696_v9  ;;  %v1485_v30 = vrot.slane %v2875_v40, %v2696_v9  ;;  %v1582_v38 = vrot.slane %v1567_v60, %v2696_v9 }
 0x14d   :  { %v1402_v35 = vadd.f32 %v2402_v55, %v1401_v14  ;;  %v1454_v12 = vrot.slane %v1432_v34, %v2692_v2  ;;  %v1462_v39 = vcombine.high %v1440_v33, %v1440_v33  ;;  %v1469_v3 = vrot.slane %v1440_v33, %v2696_v9 }
 0x14e   :  { %v1574_v2 = vrot.slane %v2954_v61, %v2696_v9 }
 0x14f   :  { %v1403_v52 = vadd.f32 %v2404_v26, %v1402_v35  ;;  %v1464_v53 = vcombine.high %v1454_v12, %v1454_v12  ;;  %v1473_v14 = vrot.slane %v1454_v12, %v2696_v9  ;;  %v1477_v0 = vrot.slane %v1462_v39, %v2696_v9 }
 0x151   :  { %v1404_v6 = vadd.f32 %v2406_v29, %v1403_v52  ;;  %v2408_v5 = vpop.eup %2407  ;;  %v1481_v52 = vrot.slane %v1464_v53, %v2696_v9 }
 0x153   :  { %v1405_v7 = vadd.f32 %v2394_v18, %v1404_v6  ;;  %v1578_v6 = vrot.slane %v2963_v22, %v2696_v9 }
 0x155   :  { %v1406_v15 = vadd.f32 %v2408_v5, %v1405_v7 }
 0x157   :  { %2409 = vrcp.f32 %v1406_v15 }
 0x161   :  { %v2410_v35 = vpop.eup %2409 }
 0x162   :  { %v1408_v7 = vmul.f32 %v2410_v35, %v2396_v27  ;;  %v1409_v15 = vmul.f32 %v2410_v35, %v2398_v47  ;;  %v1410_v34 = vmul.f32 %v2410_v35, %v2400_v51  ;;  %v1411_v33 = vmul.f32 %v2410_v35, %v2402_v55 }
 0x163   :  { %v1412_v12 = vmul.f32 %v2410_v35, %v2404_v26  ;;  %v1413_v39 = vmul.f32 %v2410_v35, %v2406_v29  ;;  %v1414_v59 = vmul.f32 %v2410_v35, %v2394_v18  ;;  %v1415_v50 = vmul.f32 %v2410_v35, %v2408_v5 }
 0x164   :  { %v1716_v40 = vmul.f32 %v1679_v43, %v1408_v7  ;;  %v1717_v61 = vmul.f32 %v1683_v46, %v1409_v15  ;;  %v1718_v22 = vmul.f32 %v2887_v62, %v1410_v34  ;;  %v1719_v53 = vmul.f32 %v2890_v24, %v1411_v33 }
 0x165   :  { %v1720_v27 = vmul.f32 %v1695_v11, %v1412_v12  ;;  %v1721_v18 = vmul.f32 %v1699_v13, %v1413_v39  ;;  %v1506_v47 = vmul.f32 %v1469_v3, %v1408_v7  ;;  %v1507_v51 = vmul.f32 %v1473_v14, %v1409_v15 }
 0x166   :  { %v1724_v17 = vadd.f32 %v1717_v61, %v1716_v40  ;;  %v1508_v43 = vmul.f32 %v1477_v0, %v1410_v34  ;;  %v1509_v55 = vmul.f32 %v1481_v52, %v1411_v33  ;;  %v1510_v26 = vmul.f32 %v1485_v30, %v1412_v12 }
 0x167   :  { %v1514_v41 = vadd.f32 %v1507_v51, %v1506_v47  ;;  %v1821_v46 = vmul.f32 %v1784_v63, %v1408_v7  ;;  %v1822_v19 = vmul.f32 %v1788_v42, %v1409_v15  ;;  %v1823_v62 = vmul.f32 %v2946_v16, %v1410_v34  ;;  %v2390_v47 = vld [vmem:[%s3102_s7 + $0x28] sm:$0xff]   ;;  %v2391_v51 = vld [vmem:[%s3102_s7 + $0x30] sm:$0xff]  }
 0x168   :  { %v1725_v24 = vadd.f32 %v1724_v17, %v1718_v22  ;;  %v1824_v44 = vmul.f32 %v2957_v8, %v1411_v33  ;;  %v1825_v11 = vmul.f32 %v1800_v4, %v1412_v12  ;;  %v1826_v13 = vmul.f32 %v1804_v45, %v1413_v39  ;;  %v2392_v17 = vld [vmem:[%s3102_s7 + $0x38] sm:$0xff]  }
 0x169   :  { %v1515_v29 = vadd.f32 %v1514_v41, %v1508_v43  ;;  %v1829_v36 = vadd.f32 %v1822_v19, %v1821_v46  ;;  %v1611_v63 = vmul.f32 %v1574_v2, %v1408_v7  ;;  %v1612_v5 = vmul.f32 %v1578_v6, %v1409_v15  ;;  %v2252_v43 = vpop.f32.mrb[4].mxu1 }
 0x16a   :  { %v1726_v60 = vadd.f32 %v1725_v24, %v1719_v53  ;;  %v1613_v56 = vmul.f32 %v1582_v38, %v1410_v34  ;;  %v1614_v42 = vmul.f32 %v1586_v32, %v1411_v33  ;;  %v1615_v16 = vmul.f32 %v1590_v10, %v1412_v12  ;;  %v2387_v53 = vld [vmem:[%s3102_s7 + $0x10] sm:$0xff]  }
 0x16b   :  { %v1830_v8 = vadd.f32 %v1829_v36, %v1823_v62  ;;  %v1616_v4 = vmul.f32 %v3107_v1, %v1413_v39  ;;  %v1619_v3 = vadd.f32 %v1612_v5, %v1611_v63  ;;  %v1511_v45 = vmul.f32 %v3108_v21, %v1413_v39  ;;  %2282 = vmatprep.mubr.bf16.mxu0 %v2387_v53 }
 0x16c   :  { %v1727_v14 = vadd.f32 %v1726_v60, %v1720_v27  ;;  %v1512_v0 = vmul.f32 %v2922_v37, %v1414_v59  ;;  %v1513_v30 = vmul.f32 %v2966_v49, %v1415_v50  ;;  %v1516_v32 = vadd.f32 %v1515_v29, %v1509_v55  ;;  %v2388_v27 = vld [vmem:[%s3102_s7 + $0x18] sm:$0xff]   ;;  %v613_v55 = vpop.f32.mrb[5].mxu1 }
 0x16d   :  { %v1831_v35 = vadd.f32 %v1830_v8, %v1824_v44  ;;  %v1620_v52 = vadd.f32 %v1619_v3, %v1613_v56  ;;  %v1617_v48 = vmul.f32 %v2983_v23, %v1414_v59  ;;  %v1618_v10 = vmul.f32 %v2992_v58, %v1415_v50  ;;  %2283 = vmatmul.mubr.bf16.gmra.mrb[20].mxu0 %v2388_v27 }
 0x16e   :  { %v1517_v2 = vadd.f32 %v1516_v32, %v1510_v26  ;;  %v1722_v54 = vmul.f32 %v2897_v25, %v1414_v59  ;;  %v1723_v6 = vmul.f32 %v2986_v28, %v1415_v50  ;;  %v1728_v38 = vadd.f32 %v1727_v14, %v1721_v18  ;;  %v2382_v28 = vld [vmem:[#allocation2 + $0x28] sm:$0xff]   ;;  %v2389_v18 = vld [vmem:[%s3102_s7 + $0x20] sm:$0xff]   ;;  %v2253_v26 = vpop.f32.mrb[6].mxu1 }
 0x16f   :  { %v1832_v9 = vadd.f32 %v1831_v35, %v1825_v11  ;;  %v1621_v20 = vadd.f32 %v1620_v52, %v1614_v42  ;;  %v1827_v7 = vmul.f32 %v2951_v31, %v1414_v59  ;;  %v1828_v37 = vmul.f32 %v2989_v57, %v1415_v50  ;;  %2304 = vmatprep.subr.bf16.mxu1 %v2382_v28  ;;  %v2383_v59 = vld [vmem:[%s3100_s5 + $0x30] sm:$0xff]   ;;  %v2384_v31 = vld [vmem:[%s3100_s5 + $0x38] sm:$0xff]   ;;  %v615_v41 = vpop.f32.mrb[7].mxu1 }
 0x170   :  { %v1518_v49 = vadd.f32 %v1517_v2, %v1511_v45  ;;  %v1729_v15 = vadd.f32 %v1728_v38, %v1722_v54  ;;  %2305 = vmatpush3.bf16.msra.mxu1 %v2382_v28  ;;  %v2385_v50 = vld [vmem:[#allocation2 + $0x30] sm:$0xff]   ;;  %2258 = vmatprep.mubr.bf16.mxu1 %v2383_v59  ;;  %v2386_v57 = vld [vmem:[#allocation2 + $0x38] sm:$0xff]   ;;  %v2256_v46 = vpop.f32.mrb[8].mxu1 }
 0x171   :  { %v1622_v34 = vadd.f32 %v1621_v20, %v1615_v16  ;;  %v1833_v33 = vadd.f32 %v1832_v9, %v1826_v13  ;;  %2306 = vmatprep.subr.bf16.mxu1 %v2385_v50  ;;  %2259 = vmatmul.mubr.bf16.gmra.mrb[12].mxu1 %v2384_v31  ;;  %v625_v19 = vpop.f32.mrb[9].mxu1 }
 0x172   :  { %v1519_v12 = vadd.f32 %v1518_v49, %v1512_v0  ;;  %v1730_v23 = vadd.f32 %v1729_v15, %v1723_v6  ;;  %2286 = vmatprep.mubr.bf16.mxu0 %v2389_v18  ;;  %v2257_v62 = vpop.f32.mrb[10].mxu1 }
 0x173   :  { %v1623_v39 = vadd.f32 %v1622_v34, %v1616_v4  ;;  %v1834_v58 = vadd.f32 %v1833_v33, %v1827_v7  ;;  %v627_v24 = vpop.f32.mrb[11].mxu1 }
 0x174   :  { %v1520_v40 = vadd.f32 %v1519_v12, %v1513_v30  ;;  %2307 = vmatpush3.bf16.msra.mxu1 %v2385_v50 }
 0x175   :  { %v1624_v61 = vadd.f32 %v1623_v39, %v1617_v48  ;;  %v1835_v25 = vadd.f32 %v1834_v58, %v1828_v37  ;;  %2308 = vmatprep.subr.bf16.mxu1 %v2386_v57  ;;  %2287 = vmatmul.mubr.bf16.gmra.mrb[24].mxu0 %v2390_v47  ;;  %v2125_v58 = vld [vmem:[%s3105_s10] ss:$0 sm:$0xff]  ;;  %s2464_s10 = smov [#allocation5]  }
 0x176   :  { %1836 = vxpose.xlu0.b32.start [1/4] (short) %v1520_v40, 128  ;;  %2290 = vmatprep.mubr.bf16.mxu0 %v2391_v51  ;;  %s2065_s16 = sshll.u32 %s2464_s10, 4  ;;  %s2066_s16 = int_to_ptr.vmem [resolvable:$true] %s2065_s16 }
 0x177   :  { %v1625_v22 = vadd.f32 %v1624_v61, %v1618_v10  ;;  %s2433_s3 = scalar_lea.vmem %s2066_s16, 2048  ;;  %p2438_p9 = scmp.lt.s32.totalorder %s2066_s16, %s2066_s16 }
 0x178   :  { %2309 = vmatpush3.bf16.msra.mxu1 %v2386_v57  ;;  %p2434_p8 = scmp.ne.s32.totalorder %s2066_s16, %s2433_s3  ;;  %p2439_p10 = scmp.lt.s32.totalorder %s2433_s3, %s2433_s3 }
 0x17a   :  { %1837 = vxpose.xlu0.b32.cont [2/4] (short) %v1625_v22, 128  ;;  %p2440_p11 = por %p2439_p10, %p2438_p9 }
 0x17c   :  { %p2441_p12 = pnand %p2440_p11, %p2434_p8 }
 0x17d   :  { %2291 = vmatmul.mubr.bf16.gmra.mrb[28].mxu0 %v2392_v17 }
 0x17e   :  { %1838 = vxpose.xlu0.b32.cont [3/4] (short) %v1730_v23, 128 }
 0x182   :  { %1839 = vxpose.xlu0.b32.end [4/4] (short) %v1835_v25, 128 }
 0x1f6   :  { %v1852_v44 = vpop.trf.xlu0 }
 0x1fa   :  { %v1853_v11 = vpop.trf.xlu0 }
 0x1fb   :  { %v1868_v13 = vpack.c.bf16 %v1853_v11, %v1852_v44 }
 0x1fd   :  { %2310 = vmatprep.mubr.bf16.mxu1 %v1868_v13 }
 0x1fe   :  { %v1854_v29 = vpop.trf.xlu0 }
 0x202   :  { %v1855_v36 = vpop.trf.xlu0 }
 0x203   :  { %v1869_v63 = vpack.c.bf16 %v1855_v36, %v1854_v29 }
 0x205   :  { %2311 = vmatmul.mubr.bf16.vlgmr.msra.gmra.mrb[16].mxu1 %v1869_v63 }
 0x206   :  { %v1856_v5 = vpop.trf.xlu0 }
 0x20a   :  { %v1857_v60 = vpop.trf.xlu0 }
 0x20b   :  { %v1870_v56 = vpack.c.bf16 %v1857_v60, %v1856_v5 }
 0x20d   :  { %2314 = vmatprep.mubr.bf16.mxu1 %v1870_v56 }
 0x20e   :  { %v1858_v42 = vpop.trf.xlu0 }
 0x212   :  { %v1859_v16 = vpop.trf.xlu0 }
 0x213   :  { %v1871_v8 = vpack.c.bf16 %v1859_v16, %v1858_v42 }
 0x215   :  { %2315 = vmatmul.mubr.bf16.gmra.mrb[20].mxu1 %v1871_v8 }
 0x216   :  { %v1860_v1 = vpop.trf.xlu0 }
 0x21a   :  { %v1861_v4 = vpop.trf.xlu0 }
 0x21b   :  { %v1872_v3 = vpack.c.bf16 %v1861_v4, %v1860_v1 }
 0x21d   :  { %2318 = vmatprep.mubr.bf16.mxu1 %v1872_v3 }
 0x21e   :  { %v1862_v21 = vpop.trf.xlu0 }
 0x222   :  { %v1863_v45 = vpop.trf.xlu0 }
 0x223   :  { %v1873_v14 = vpack.c.bf16 %v1863_v45, %v1862_v21 }
 0x225   :  { %2319 = vmatmul.mubr.bf16.gmra.mrb[24].mxu1 %v1873_v14 }
 0x226   :  { %v1864_v0 = vpop.trf.xlu0 }
 0x22a   :  { %v1865_v30 = vpop.trf.xlu0 }
 0x22b   :  { %v1874_v32 = vpack.c.bf16 %v1865_v30, %v1864_v0 }
 0x22d   :  { %2322 = vmatprep.mubr.bf16.mxu1 %v1874_v32 }
 0x22e   :  { %v1866_v35 = vpop.trf.xlu0 }
 0x232   :  { %v1867_v52 = vpop.trf.xlu0 }
 0x233   :  { %v1875_v48 = vpack.c.bf16 %v1867_v52, %v1866_v35 }
 0x235   :  { %2323 = vmatmul.mubr.bf16.gmra.mrb[28].mxu1 %v1875_v48 }
 0x240   :  { %v2284_v38 = vpop.f32.mrb[20].mxu0 }
 0x241   :  { %v910_v9 = vpop.f32.mrb[21].mxu0 }
 0x242   :  { %v2285_v20 = vpop.f32.mrb[22].mxu0 }
 0x243   :  { %v912_v7 = vpop.f32.mrb[23].mxu0 }
 0x244   :  { %v2260_v10 = vpop.f32.mrb[12].mxu1 }
 0x245   :  { %v637_v2 = vpop.f32.mrb[13].mxu1 }
 0x246   :  { %v2261_v54 = vpop.f32.mrb[14].mxu1 }
 0x247   :  { %v639_v6 = vpop.f32.mrb[15].mxu1 }
 0x248   :  { %v2288_v37 = vpop.f32.mrb[24].mxu0 }
 0x249   :  { %v922_v49 = vpop.f32.mrb[25].mxu0 }
 0x24a   :  { %v2289_v15 = vpop.f32.mrb[26].mxu0 }
 0x24b   :  { %v924_v34 = vpop.f32.mrb[27].mxu0 }
 0x250   :  { %v2292_v33 = vpop.f32.mrb[28].mxu0 }
 0x251   :  { %v934_v12 = vpop.f32.mrb[29].mxu0 }
 0x252   :  { %v2293_v23 = vpop.f32.mrb[30].mxu0 }
 0x253   :  { %v936_v39 = vpop.f32.mrb[31].mxu0 }
 0x2d8   :  { %v2312_v40 = vpop.f32.mrb[16].mxu1 }
 0x2d9   :  { %v1990_v61 = vadd.f32 %v2312_v40, %v2125_v58  ;;  %v1981_v25 = vpop.f32.mrb[17].mxu1 }
 0x2da   :  { %v1982_v28 = vadd.f32 %v2125_v58, %v1981_v25  ;;  %v2313_v22 = vpop.f32.mrb[18].mxu1 }
 0x2db   :  { %2046 = vst [vmem:[#allocation5 + $0x10] sm:$0xff] %v1990_v61  ;;  %v1993_v59 = vadd.f32 %v2313_v22, %v2125_v58  ;;  %v1984_v31 = vpop.f32.mrb[19].mxu1 }
 0x2dc   :  { %2044 = vst [vmem:[#allocation5] sm:$0xff] %v1982_v28  ;;  %v1985_v50 = vadd.f32 %v2125_v58, %v1984_v31 }
 0x2dd   :  { %2047 = vst [vmem:[#allocation5 + $0x18] sm:$0xff] %v1993_v59 }
 0x2de   :  { %2045 = vst [vmem:[#allocation5 + $0x8] sm:$0xff] %v1985_v50 }
 0x2e8   :  { %v2316_v57 = vpop.f32.mrb[20].mxu1 }
 0x2e9   :  { %v2006_v53 = vadd.f32 %v2316_v57, %v2125_v58  ;;  %v1997_v27 = vpop.f32.mrb[21].mxu1 }
 0x2ea   :  { %v1998_v18 = vadd.f32 %v2125_v58, %v1997_v27  ;;  %v2317_v47 = vpop.f32.mrb[22].mxu1 }
 0x2eb   :  { %2050 = vst [vmem:[#allocation5 + $0x30] sm:$0xff] %v2006_v53  ;;  %v2009_v51 = vadd.f32 %v2317_v47, %v2125_v58  ;;  %v2000_v17 = vpop.f32.mrb[23].mxu1 }
 0x2ec   :  { %2048 = vst [vmem:[#allocation5 + $0x20] sm:$0xff] %v1998_v18  ;;  %v2001_v43 = vadd.f32 %v2125_v58, %v2000_v17 }
 0x2ed   :  { %2051 = vst [vmem:[#allocation5 + $0x38] sm:$0xff] %v2009_v51 }
 0x2ee   :  { %2049 = vst [vmem:[#allocation5 + $0x28] sm:$0xff] %v2001_v43 }
 0x2f8   :  { %v2320_v55 = vpop.f32.mrb[24].mxu1 }
 0x2f9   :  { %v2022_v26 = vadd.f32 %v2320_v55, %v2125_v58  ;;  %v2013_v41 = vpop.f32.mrb[25].mxu1 }
 0x2fa   :  { %v2014_v46 = vadd.f32 %v2125_v58, %v2013_v41  ;;  %v2321_v19 = vpop.f32.mrb[26].mxu1 }
 0x2fb   :  { %2054 = vst [vmem:[#allocation5 + $0x50] sm:$0xff] %v2022_v26  ;;  %v2025_v62 = vadd.f32 %v2321_v19, %v2125_v58  ;;  %v2016_v24 = vpop.f32.mrb[27].mxu1 }
 0x2fc   :  { %2052 = vst [vmem:[#allocation5 + $0x40] sm:$0xff] %v2014_v46  ;;  %v2017_v44 = vadd.f32 %v2125_v58, %v2016_v24 }
 0x2fd   :  { %2055 = vst [vmem:[#allocation5 + $0x58] sm:$0xff] %v2025_v62 }
 0x2fe   :  { %2053 = vst [vmem:[#allocation5 + $0x48] sm:$0xff] %v2017_v44 }
 0x308   :  { %v2324_v11 = vpop.f32.mrb[28].mxu1 }
 0x309   :  { %v2038_v13 = vadd.f32 %v2324_v11, %v2125_v58  ;;  %v2029_v29 = vpop.f32.mrb[29].mxu1 }
 0x30a   :  { %v2030_v36 = vadd.f32 %v2125_v58, %v2029_v29  ;;  %v2325_v63 = vpop.f32.mrb[30].mxu1 }
 0x30b   :  { %2058 = vst [vmem:[#allocation5 + $0x70] sm:$0xff] %v2038_v13  ;;  %v2041_v5 = vadd.f32 %v2325_v63, %v2125_v58  ;;  %v2032_v60 = vpop.f32.mrb[31].mxu1 }
 0x30c   :  { %2056 = vst [vmem:[#allocation5 + $0x60] sm:$0xff] %v2030_v36  ;;  %v2033_v56 = vadd.f32 %v2125_v58, %v2032_v60 }
 0x30d   :  { %2059 = vst [vmem:[#allocation5 + $0x78] sm:$0xff] %v2041_v5 }
 0x30e   :  { %2057 = vst [vmem:[#allocation5 + $0x68] sm:$0xff] %v2033_v56 }
 0x30f   :  { %2444 = shalt.err (!%p2441_p12)
}
 0x310   :  { %s2445_s8 = scalar_lea.hbm %s3106_s11, 2048 }
 0x311   :  { %p2446_p13 = scmp.ne.s32.totalorder %s3106_s11, %s2445_s8  ;;  %p2449_p0 = scmp.lt.u32.totalorder %s2445_s8, %s3106_s11 }
 0x313   :  { %p2451_p1 = pnand %p2449_p0, %p2446_p13 }
 0x315   :  { %2454 = shalt.err (!%p2451_p1)
}
 0x316   :  { %s2465_s21 = smov 128   ;;  %s2466_s22 = smov 8  }
 0x317   :  { %2071 = dma.vmem_to_hbm [thread:$0]  %s2066_s16, 2048, %s3106_s11, [#allocation4], %s2465_s21, %s2465_s21, %s2466_s22  }
 0x318   :  { %2457 = dma.done.wait [#allocation4], 2048  }
 0x319   :  { %2458 = vsyncadd [#allocation4], 4294965248 }
 0x31a   :  { %2075 = vsyncpa [#allocation3], 1 }
 0x31b   :  { %2076 = vsyncpa [#allocation4], 1 }

</bundles_post_ra>
